<compile_context>
chip_gen: v7x
topology: tpu7x:2x2x1
jax: 0.10.0
libtpu: 0.0.40
codegen_flags: <defaults>
</compile_context>

<pallas_src>
import functools

import jax
import jax.numpy as jnp
from jax.experimental import pallas as pl
from jax.experimental.pallas import tpu as pltpu

RADIUS = 0.1
NSAMPLE = 16


def _end_dist_kernel(p1_ref, p2_ref, p2t_ref, dist_ref, *, radius, nsample):
    # p1_ref   : [Bt, S, C] recon
    # p2_ref   : [Bt, M, C] gt
    # p2t_ref  : [Bt, C, M] gt^T (points on lanes, for p2_sq + cross)
    # dist_ref : [Bt, S, 1]
    p1 = p1_ref[...]                                               # [Bt, S, C]
    p2 = p2_ref[...]                                               # [Bt, M, C]
    p2t = p2t_ref[...]                                             # [Bt, C, M]
    Bt, S, C = p1.shape
    M = p2t.shape[2]

    # Strictly-upper prefix matrix, generated in-kernel (cheap VPU compares,
    # avoids an HBM-resident constant and its double-buffered VMEM copy).
    row = jax.lax.broadcasted_iota(jnp.int32, (M, M), 0)
    col = jax.lax.broadcasted_iota(jnp.int32, (M, M), 1)
    prefix = (row < col).astype(jnp.bfloat16)                      # [M, M]

    # cross[b,s,m] = <recon[b,s], gt[b,m]>  (canonical MXU orientation)
    cross = jnp.einsum('bsc,bcm->bsm', p1, p2t,
                       preferred_element_type=jnp.float32)         # [Bt, S, M]

    # --- query_ball_point, with the ball test folded into one add + compare:
    #   ||p1-p2||^2 <= r^2   <=>   cross >= 0.5*(|p1|^2 + |p2|^2 - r^2)
    p1_sq = jnp.sum(p1 * p1, axis=2, keepdims=True)                # [Bt, S, 1]
    p2_sq = jnp.sum(p2t * p2t, axis=1, keepdims=True)              # [Bt, 1, M]
    thresh = (0.5 * p1_sq - 0.5 * radius * radius) + 0.5 * p2_sq   # [Bt, S, M]
    in_ball = cross >= thresh                                      # [Bt, S, M]
    # NOTE: the expansion can flip points sitting exactly on the ball boundary
    # relative to a direct (p1-p2)^2 evaluation; acceptable for this loss.

    # rank[b,s,m] = #in-ball points with index < m (exclusive prefix count),
    # as one stacked bf16 MXU matmul (exact: 0/1 operands, f32 accumulation).
    mask_bf = in_ball.astype(jnp.bfloat16)
    rank = jnp.dot(mask_bf.reshape(Bt * S, M), prefix,
                   preferred_element_type=jnp.float32).reshape(Bt, S, M)

    # Total in-ball count from rank's last column (no cross-lane reduce).
    k = rank[:, :, M - 1:M] + in_ball[:, :, M - 1:M].astype(jnp.float32)
    extra = jnp.maximum(jnp.float32(nsample) - k, 0.0)             # [Bt, S, 1]
    # TODO(synk): a query with zero in-ball neighbors gets an all-zero weight
    # row here; the PyTorch code would index out of bounds (undefined/crash).
    sel_take = jnp.where(rank < nsample - 0.5, 1.0, 0.0)           # first nsample
    sel_first = jnp.where(rank < 0.5, 1.0, 0.0)                    # first in-ball
    weight = jnp.where(in_ball, sel_take + extra * sel_first, 0.0) # [Bt, S, M]

    # --- index_points + (grouped - p1) summed over nsample, fused as a matmul
    # in canonical orientation (weight is the LHS -> no transpose inserted).
    sum_sel = jnp.einsum('bsm,bmc->bsc', weight, p2,
                         preferred_element_type=jnp.float32)       # [Bt, S, C]
    diff = sum_sel - jnp.float32(nsample) * p1                     # [Bt, S, C]
    dist_ref[...] = jnp.sqrt(jnp.sum(diff * diff, axis=2, keepdims=True))


def compute_end_loss(recon_points, gt_points, radius=RADIUS, nsample=NSAMPLE,
                     block_b=None, vmem_limit_bytes=32 * 1024 * 1024):
    """ComputeEndLoss.forward(recon_points, gt_points)."""
    B, S, C = recon_points.shape
    Bg, M, Cg = gt_points.shape
    assert B == Bg and C == Cg

    recon = (recon_points if recon_points.dtype == jnp.float32
             else recon_points.astype(jnp.float32))
    gt = (gt_points if gt_points.dtype == jnp.float32
          else gt_points.astype(jnp.float32))
    gt_t = jnp.transpose(gt, (0, 2, 1))                            # [B, C, M]

    if block_b is None:
        # VMEM model: ~8 live f32-equivalent [bb,S,M] intermediates
        # (cross/thresh/in_ball/mask/rank/sel_take/sel_first/weight)
        # plus 2x double-buffered input/output blocks; keep under 70% of limit.
        per_b = 32 * S * M + 8 * C * (S + 2 * M) + 8 * S
        cap = max(1, int(0.7 * vmem_limit_bytes) // per_b)
        block_b = min(B, cap)
        if B >= 2:
            # v7x has 2 TensorCores: want a grid with >= 2 parallel steps.
            block_b = min(block_b, max(1, B // 2))
        while B % block_b:          # BlockSpec tiling must divide B
            block_b -= 1
    assert B % block_b == 0

    flops = int(B * S * M * (2 * M + 4 * C + 12))
    bytes_accessed = int(4 * (B * S * C + 2 * B * M * C + B * S))

    kernel = functools.partial(_end_dist_kernel, radius=float(radius),
                               nsample=int(nsample))
    dist = pl.pallas_call(
        kernel,
        out_shape=jax.ShapeDtypeStruct((B, S, 1), jnp.float32),
        grid=(B // block_b,),
        in_specs=[
            pl.BlockSpec((block_b, S, C), lambda b: (b, 0, 0)),
            pl.BlockSpec((block_b, M, C), lambda b: (b, 0, 0)),
            pl.BlockSpec((block_b, C, M), lambda b: (b, 0, 0)),
        ],
        out_specs=pl.BlockSpec((block_b, S, 1), lambda b: (b, 0, 0)),
        compiler_params=pltpu.CompilerParams(
            dimension_semantics=("parallel",),
            vmem_limit_bytes=int(vmem_limit_bytes)),
        cost_estimate=pl.CostEstimate(flops=flops, transcendentals=int(B * S),
                                      bytes_accessed=bytes_accessed),
    )(recon, gt, gt_t)

    dist1 = jnp.mean(dist)              # torch.mean over [B, S]
    return dist1 / S * 24.0


# --- pure-JAX reference mirroring the PyTorch code (sort + gather) -----------
def reference_loss(p1, p2, radius=RADIUS, nsample=NSAMPLE):
    B, S, C = p1.shape
    M = p2.shape[1]
    sqr = jnp.sum((p1[:, :, None, :] - p2[:, None, :, :]) ** 2, axis=-1)  # [B,S,M]
    idx = jnp.broadcast_to(jnp.arange(M), (B, S, M))
    idx = jnp.where(sqr > radius ** 2, M, idx)
    idx = jnp.sort(idx, axis=-1)[:, :, :nsample]
    first = idx[:, :, :1]
    idx = jnp.where(idx == M, jnp.broadcast_to(first, idx.shape), idx)
    gathered = jax.vmap(lambda pts, ix: pts[ix])(p2, idx)                 # [B,S,ns,C]
    d = jnp.sum(gathered - p1[:, :, None, :], axis=2)                     # [B,S,C]
    dist = jnp.sqrt(jnp.sum(d * d, axis=2))                               # [B,S]
    return jnp.mean(dist) / S * 24.0


if __name__ == "__main__":
    key = jax.random.PRNGKey(0)
    k1, k2 = jax.random.split(key)
    B, S, M, C = 2, 128, 128, 3
    recon = jax.random.uniform(k1, (B, S, C), dtype=jnp.float32)
    # gt jittered around recon so every query ball (radius=0.1) is non-empty
    gt = recon + 0.02 * jax.random.normal(k2, (B, M, C), dtype=jnp.float32)

    loss = jax.block_until_ready(compute_end_loss(recon, gt))
    ref = reference_loss(recon, gt)
    assert jnp.allclose(loss, ref, rtol=1e-4, atol=1e-5), (loss, ref)
    print("KERNEL_OK")
</pallas_src>

<mosaic_0001>
module attributes {stable_mosaic.version = 11 : i64} {
  func.func @_end_dist_kernel(%arg0: i32, %arg1: memref<1x128x3xf32, #tpu.memory_space<vmem>>, %arg2: memref<1x128x3xf32, #tpu.memory_space<vmem>>, %arg3: memref<1x3x128xf32, #tpu.memory_space<vmem>>, %arg4: memref<1x128x1xf32, #tpu.memory_space<vmem>>) attributes {dimension_semantics = [#tpu.dimension_semantics<parallel>], iteration_bounds = array<i64: 2>, scalar_prefetch = 0 : i64, scratch_operands = 0 : i64, tpu.core_type = #tpu.core_type<tc>, window_params = [{transform_indices = @transform_0, window_bounds = array<i64: 1, 128, 3>}, {transform_indices = @transform_1, window_bounds = array<i64: 1, 128, 3>}, {transform_indices = @transform_2, window_bounds = array<i64: 1, 3, 128>}, {transform_indices = @transform_3, window_bounds = array<i64: 1, 128, 1>}]} {
    %c0 = arith.constant 0 : index
    %c0_0 = arith.constant 0 : index
    %c0_1 = arith.constant 0 : index
    %0 = vector.load %arg1[%c0, %c0_0, %c0_1] : memref<1x128x3xf32, #tpu.memory_space<vmem>>, vector<1x128x3xf32>
    %c0_2 = arith.constant 0 : index
    %c0_3 = arith.constant 0 : index
    %c0_4 = arith.constant 0 : index
    %1 = vector.load %arg2[%c0_2, %c0_3, %c0_4] : memref<1x128x3xf32, #tpu.memory_space<vmem>>, vector<1x128x3xf32>
    %c0_5 = arith.constant 0 : index
    %c0_6 = arith.constant 0 : index
    %c0_7 = arith.constant 0 : index
    %2 = vector.load %arg3[%c0_5, %c0_6, %c0_7] : memref<1x3x128xf32, #tpu.memory_space<vmem>>, vector<1x3x128xf32>
    %3 = tpu.iota {dimensions = array<i32: 0>} : vector<128x128xi32>
    %4 = tpu.iota {dimensions = array<i32: 1>} : vector<128x128xi32>
    %5 = arith.cmpi slt, %3, %4 : vector<128x128xi32>
    %6 = arith.extui %5 : vector<128x128xi1> to vector<128x128xi32>
    %7 = arith.sitofp %6 : vector<128x128xi32> to vector<128x128xf32>
    %8 = arith.truncf %7 : vector<128x128xf32> to vector<128x128xbf16>
    "tpu.trace_start"() <{level = 10 : i32, message = "bsc,bcm->bsm"}> : () -> ()
    %cst = arith.constant dense<0.000000e+00> : vector<1x128x128xf32>
    %9 = tpu.matmul %0, %2, %cst {dimension_numbers = #tpu.dot_dimension_numbers<[2], [1], [1], [2], [0, 0, 0, 1, 1, 2], [0], [0]>} : vector<1x128x3xf32>, vector<1x3x128xf32>, vector<1x128x128xf32> -> vector<1x128x128xf32>
    "tpu.trace_stop"() : () -> ()
    %10 = arith.mulf %0, %0 : vector<1x128x3xf32>
    %cst_8 = arith.constant dense<0.000000e+00> : vector<1x128xf32>
    %11 = vector.multi_reduction <add>, %10, %cst_8 [2] : vector<1x128x3xf32> to vector<1x128xf32>
    %12 = vector.shape_cast %11 : vector<1x128xf32> to vector<1x128x1xf32>
    %13 = arith.mulf %2, %2 : vector<1x3x128xf32>
    %cst_9 = arith.constant dense<0.000000e+00> : vector<1x128xf32>
    %14 = vector.multi_reduction <add>, %13, %cst_9 [1] : vector<1x3x128xf32> to vector<1x128xf32>
    %15 = vector.shape_cast %14 : vector<1x128xf32> to vector<1x1x128xf32>
    %cst_10 = arith.constant 5.000000e-01 : f32
    %16 = vector.broadcast %cst_10 : f32 to vector<1x128x1xf32>
    %17 = arith.mulf %16, %12 : vector<1x128x1xf32>
    %cst_11 = arith.constant 5.000000e-03 : f32
    %18 = vector.broadcast %cst_11 : f32 to vector<1x128x1xf32>
    %19 = arith.subf %17, %18 : vector<1x128x1xf32>
    %cst_12 = arith.constant 5.000000e-01 : f32
    %20 = vector.broadcast %cst_12 : f32 to vector<1x1x128xf32>
    %21 = arith.mulf %20, %15 : vector<1x1x128xf32>
    %22 = vector.broadcast %19 : vector<1x128x1xf32> to vector<1x128x128xf32>
    %23 = vector.broadcast %21 : vector<1x1x128xf32> to vector<1x128x128xf32>
    %24 = arith.addf %22, %23 : vector<1x128x128xf32>
    %25 = arith.cmpf oge, %9, %24 : vector<1x128x128xf32>
    %26 = arith.extui %25 : vector<1x128x128xi1> to vector<1x128x128xi32>
    %27 = arith.sitofp %26 : vector<1x128x128xi32> to vector<1x128x128xf32>
    %28 = arith.truncf %27 : vector<1x128x128xf32> to vector<1x128x128xbf16>
    %29 = vector.shape_cast %28 : vector<1x128x128xbf16> to vector<128x128xbf16>
    %cst_13 = arith.constant dense<0.000000e+00> : vector<128x128xf32>
    %30 = tpu.matmul %29, %8, %cst_13 {dimension_numbers = #tpu.dot_dimension_numbers<[1], [0], [0], [1], [0, 0, 1, 1], [], []>} : vector<128x128xbf16>, vector<128x128xbf16>, vector<128x128xf32> -> vector<128x128xf32>
    %31 = vector.shape_cast %30 : vector<128x128xf32> to vector<1x128x128xf32>
    %32 = vector.extract_strided_slice %31 {offsets = [0, 0, 127], sizes = [1, 128, 1], strides = [1, 1, 1]} : vector<1x128x128xf32> to vector<1x128x1xf32>
    %33 = vector.extract_strided_slice %25 {offsets = [0, 0, 127], sizes = [1, 128, 1], strides = [1, 1, 1]} : vector<1x128x128xi1> to vector<1x128x1xi1>
    %34 = arith.extui %33 : vector<1x128x1xi1> to vector<1x128x1xi32>
    %35 = arith.sitofp %34 : vector<1x128x1xi32> to vector<1x128x1xf32>
    %36 = arith.addf %32, %35 : vector<1x128x1xf32>
    %cst_14 = arith.constant 1.600000e+01 : f32
    %37 = vector.broadcast %cst_14 : f32 to vector<1x128x1xf32>
    %38 = arith.subf %37, %36 : vector<1x128x1xf32>
    %cst_15 = arith.constant 0.000000e+00 : f32
    %39 = vector.broadcast %cst_15 : f32 to vector<1x128x1xf32>
    %40 = arith.maximumf %38, %39 : vector<1x128x1xf32>
    %cst_16 = arith.constant 1.550000e+01 : f32
    %41 = vector.broadcast %cst_16 : f32 to vector<1x128x128xf32>
    %42 = arith.cmpf olt, %31, %41 : vector<1x128x128xf32>
    %cst_17 = arith.constant 1.000000e+00 : f32
    %cst_18 = arith.constant 0.000000e+00 : f32
    %43 = vector.broadcast %cst_17 : f32 to vector<1x128x128xf32>
    %44 = vector.broadcast %cst_18 : f32 to vector<1x128x128xf32>
    %45 = arith.select %42, %43, %44 : vector<1x128x128xi1>, vector<1x128x128xf32>
    %cst_19 = arith.constant 5.000000e-01 : f32
    %46 = vector.broadcast %cst_19 : f32 to vector<1x128x128xf32>
    %47 = arith.cmpf olt, %31, %46 : vector<1x128x128xf32>
    %cst_20 = arith.constant 1.000000e+00 : f32
    %cst_21 = arith.constant 0.000000e+00 : f32
    %48 = vector.broadcast %cst_20 : f32 to vector<1x128x128xf32>
    %49 = vector.broadcast %cst_21 : f32 to vector<1x128x128xf32>
    %50 = arith.select %47, %48, %49 : vector<1x128x128xi1>, vector<1x128x128xf32>
    %51 = vector.broadcast %40 : vector<1x128x1xf32> to vector<1x128x128xf32>
    %52 = arith.mulf %51, %50 : vector<1x128x128xf32>
    %53 = arith.addf %45, %52 : vector<1x128x128xf32>
    %cst_22 = arith.constant 0.000000e+00 : f32
    %54 = vector.broadcast %cst_22 : f32 to vector<1x128x128xf32>
    %55 = arith.select %25, %53, %54 : vector<1x128x128xi1>, vector<1x128x128xf32>
    "tpu.trace_start"() <{level = 10 : i32, message = "bsm,bmc->bsc"}> : () -> ()
    %cst_23 = arith.constant dense<0.000000e+00> : vector<1x128x3xf32>
    %56 = tpu.matmul %55, %1, %cst_23 {dimension_numbers = #tpu.dot_dimension_numbers<[2], [1], [1], [2], [0, 0, 0, 1, 1, 2], [0], [0]>} : vector<1x128x128xf32>, vector<1x128x3xf32>, vector<1x128x3xf32> -> vector<1x128x3xf32>
    "tpu.trace_stop"() : () -> ()
    %cst_24 = arith.constant 1.600000e+01 : f32
    %57 = vector.broadcast %cst_24 : f32 to vector<1x128x3xf32>
    %58 = arith.mulf %57, %0 : vector<1x128x3xf32>
    %59 = arith.subf %56, %58 : vector<1x128x3xf32>
    %60 = arith.mulf %59, %59 : vector<1x128x3xf32>
    %cst_25 = arith.constant dense<0.000000e+00> : vector<1x128xf32>
    %61 = vector.multi_reduction <add>, %60, %cst_25 [2] : vector<1x128x3xf32> to vector<1x128xf32>
    %62 = vector.shape_cast %61 : vector<1x128xf32> to vector<1x128x1xf32>
    %63 = math.sqrt %62 : vector<1x128x1xf32>
    %c0_26 = arith.constant 0 : index
    %c0_27 = arith.constant 0 : index
    %c0_28 = arith.constant 0 : index
    %64 = vector.load %arg4[%c0_26, %c0_27, %c0_28] : memref<1x128x1xf32, #tpu.memory_space<vmem>>, vector<1x128x1xf32>
    tpu.vector_store %arg4[%c0_26, %c0_27, %c0_28], %63 {strides = array<i32>} : memref<1x128x1xf32, #tpu.memory_space<vmem>>, vector<1x128x1xf32>,
    return
  }
  func.func @transform_0(%arg0: i32) -> (i32, i32, i32) {
    %c0_i32 = arith.constant 0 : i32
    %c0_i32_0 = arith.constant 0 : i32
    %c0_i32_1 = arith.constant 0 : i32
    return %arg0, %c0_i32, %c0_i32_0 : i32, i32, i32
  }
  func.func @transform_1(%arg0: i32) -> (i32, i32, i32) {
    %c0_i32 = arith.constant 0 : i32
    %c0_i32_0 = arith.constant 0 : i32
    %c0_i32_1 = arith.constant 0 : i32
    return %arg0, %c0_i32, %c0_i32_0 : i32, i32, i32
  }
  func.func @transform_2(%arg0: i32) -> (i32, i32, i32) {
    %c0_i32 = arith.constant 0 : i32
    %c0_i32_0 = arith.constant 0 : i32
    %c0_i32_1 = arith.constant 0 : i32
    return %arg0, %c0_i32, %c0_i32_0 : i32, i32, i32
  }
  func.func @transform_3(%arg0: i32) -> (i32, i32, i32) {
    %c0_i32 = arith.constant 0 : i32
    %c0_i32_0 = arith.constant 0 : i32
    %c0_i32_1 = arith.constant 0 : i32
    return %arg0, %c0_i32, %c0_i32_0 : i32, i32, i32
  }
}

</mosaic_0001>

<bundles_post_ra>
// kernel: tpu_custom_call.1
= control target key start
LH: loop header
LB: loop body
LE: loop exit
PB: predicated region body
PF: predicated region fallthrough
CT: control target
= control target key end

     0   :  { %s1903_s12 = smov 0   ;;  %s2605_s0 = inlined_call_operand.vmem [shape: f32[2,128,3], index: 0, kind: input, shape index: {}]   ;;  %s2606_s1 = inlined_call_operand.vmem [shape: f32[2,128,3], index: 1, kind: input, shape index: {}]   ;;  %s2607_s2 = inlined_call_operand.vmem [shape: f32[2,3,128], index: 2, kind: input, shape index: {}]   ;;  %s2608_s3 = inlined_call_operand.vmem [shape: f32[2,128,1], index: 3, kind: output, shape index: {}]  }
   0x1 LB: > { %s1478_s13 = sadd.s32 4294967295, %s1878_s12   ;;  %p1482_p0 = scmp.ge.s32.totalorder %s1878_s12, 1  ;;  %s1878_s12 = sphi %s1903_s12, %s13_s12  }
   0x2   : > { %p156_p1 = scmp.lt.s32.totalorder %s1878_s12, 3 }
   0x4   : > { %p157_p2 = pnand %p1482_p0, %p156_p1 }
   0x6   : > { %160 = sbr.rel (%p157_p2) target bundleno = 1008 (0x3f0), region = 32 }
   0xd   : > { %p189_p3 = scmp.lt.s32.totalorder %s1478_s13, 1  ;;  %v242_v0 = vlaneseq  ;;  %vm2609_vm0 = vcmask 23552   ;;  %vm366_vm1 = vcmask 1042432   ;;  %v1880_v27 = vmov 1.0|1.0  }
   0xf   : > { %s2678_s13 = smov (!%p189_p3, %s1478_s13), 1  ;;  %v1911_v1 = vshrl.u32 %v242_v0, 7  ;;  %v1916_v3 = vand.u32 127, %v242_v0 }
  0x10   : > { %s1913_s14 = sshll.u32 %s2678_s13, 7  ;;  %s1487_s15 = sshll.u32 %s2678_s13, 2 }
  0x11   : > { %v244_v2 = vadd.s32 8, %v1911_v1  ;;  %s1922_s18 = scalar_lea.vmem %s2605_s0, %s1913_s14  ;;  %s202_s21 = scalar_lea.vmem %s2607_s2, %s1487_s15  ;;  %v245_v7 = vadd.s32 16, %v1911_v1  ;;  %v246_v8 = vadd.s32 24, %v1911_v1  ;;  %vm261_vm2 = vcmp.lt.s32.totalorder %v1911_v1, %v1916_v3 }
  0x12   : > { %v209_v4 = vld [vmem:[%s1922_s18] sm:$0xff]  ;;  %v210_v5 = vld [vmem:[%s1922_s18 + $0x8] sm:$0xff]  ;;  %v211_v6 = vld [vmem:[%s1922_s18 + $0x10] sm:$0xff]  ;;  %v247_v18 = vadd.s32 32, %v1911_v1  ;;  %v248_v21 = vadd.s32 40, %v1911_v1  ;;  %v249_v30 = vadd.s32 48, %v1911_v1  ;;  %s2264_s24 = scalar_lea.vmem %s2606_s1, %s1913_s14  ;;  %s2544_s27 = scalar_lea.vmem %s2608_s3, %s1913_s14 }
  0x13   : > { %v241_v9 = vld [vmem:[%s202_s21] sm:$0x7]  ;;  %1675 = vmatprep.mubr.msk.f32.mxu0 %vm2609_vm0, %v209_v4  ;;  %v212_v10 = vld [vmem:[%s1922_s18 + $0x18] sm:$0xff]  ;;  %v515_v11 = vmul.f32 %v209_v4, %v209_v4  ;;  %v517_v12 = vmul.f32 %v211_v6, %v211_v6  ;;  %v516_v13 = vmul.f32 %v210_v5, %v210_v5  ;;  %vm262_vm3 = vcmp.lt.s32.totalorder %v244_v2, %v1916_v3  ;;  %v214_v22 = vld [vmem:[%s1922_s18 + $0x28] sm:$0xff] }
  0x14   : > { %1673 = vmatprep.subr.msk.mxu0 %vm366_vm1, %v241_v9  ;;  %v579_v14 = vmul.f32 %v241_v9, %v241_v9  ;;  %v518_v15 = vmul.f32 %v212_v10, %v212_v10  ;;  %v213_v20 = vld [vmem:[%s1922_s18 + $0x20] sm:$0xff]  ;;  %vm263_vm4 = vcmp.lt.s32.totalorder %v245_v7, %v1916_v3  ;;  %vm264_vm5 = vcmp.lt.s32.totalorder %v246_v8, %v1916_v3  ;;  %vm1555_vm6 = vmpackc.low %vm262_vm3, %vm261_vm2  ;;  %v215_v29 = vld [vmem:[%s1922_s18 + $0x30] sm:$0xff] }
  0x15   : > { %1674 = vmatpush3.msk.msra.mxu0 %vm366_vm1, %v241_v9  ;;  %v531_v16 = vsel %vm2609_vm0, %v515_v11, 0.0  ;;  %v537_v17 = vsel %vm2609_vm0, %v517_v12, 0.0  ;;  %v534_v23 = vsel %vm2609_vm0, %v516_v13, 0.0  ;;  %v519_v24 = vmul.f32 %v213_v20, %v213_v20  ;;  %1699 = vmatprep.subr.msk.bf16.mxu1 %vm1555_vm6, %v1880_v27  ;;  %vm1961_vm7 = vmpackc.low %vm264_vm5, %vm263_vm4  ;;  %v1973_v32 = vld [vmem:[%s1922_s18 + $0x38] sm:$0xff]  ;;  %v217_v37 = vld [vmem:[%s1922_s18 + $0x40] sm:$0xff] }
  0x16   : > { %v1943_v19 = vsel %vm366_vm1, %v579_v14, 0.0  ;;  %1676 = vmatmul.mubr.msk.f32.vlgmr.msra.gmra.mrb[0].mxu0 %vm2609_vm0, %v210_v5  ;;  %532 = vadd.xlane.f32.xlu0 %v531_v16  ;;  %v540_v25 = vsel %vm2609_vm0, %v518_v15, 0.0  ;;  %v520_v26 = vmul.f32 %v214_v22, %v214_v22  ;;  %vm265_vm8 = vcmp.lt.s32.totalorder %v247_v18, %v1916_v3  ;;  %2629 = vst [vmem:[#allocation2_spill] sm:$0xff] %v1973_v32  ;;  %v1991_v38 = vld [vmem:[%s1922_s18 + $0x48] sm:$0xff]  ;;  %v2002_v43 = vld [vmem:[%s1922_s18 + $0x50] sm:$0xff]  ;;  %v2006_v44 = vld [vmem:[%s1922_s18 + $0x58] sm:$0xff] }
  0x17   : > { %1678 = vmatprep.mubr.msk.f32.mxu0 %vm2609_vm0, %v211_v6  ;;  %538 = vadd.xlane.f32.xlu1 %v537_v17  ;;  %vm266_vm9 = vcmp.lt.s32.totalorder %v248_v21, %v1916_v3  ;;  %v250_v31 = vadd.s32 56, %v1911_v1  ;;  %v543_v33 = vsel %vm2609_vm0, %v519_v24, 0.0  ;;  %v521_v34 = vmul.f32 %v215_v29, %v215_v29  ;;  %2630 = vst [vmem:[#allocation3_spill] sm:$0xff] %v1991_v38  ;;  %v2019_v49 = vld [vmem:[%s1922_s18 + $0x60] sm:$0xff]  ;;  %v2026_v52 = vld [vmem:[%s1922_s18 + $0x68] sm:$0xff]  ;;  %v2043_v58 = vld [vmem:[%s1922_s18 + $0x70] sm:$0xff] }
  0x18   : > { %1700 = vmatpush3.bf16.msk.msra.mxu1 %vm1555_vm6, %v1880_v27  ;;  %v546_v35 = vsel %vm2609_vm0, %v520_v26, 0.0  ;;  %v522_v36 = vmul.f32 %v1973_v32, %v1973_v32  ;;  %vm1559_vm10 = vmpackc.low %vm266_vm9, %vm265_vm8  ;;  %vm267_vm11 = vcmp.lt.s32.totalorder %v249_v30, %v1916_v3  ;;  %v523_v40 = vmul.f32 %v217_v37, %v217_v37  ;;  %2631 = vst [vmem:[#allocation4_spill] sm:$0xff] %v2002_v43  ;;  %v2050_v61 = vld [vmem:[%s1922_s18 + $0x78] sm:$0xff] }
  0x19   : > { %1701 = vmatprep.subr.msk.bf16.mxu1 %vm1961_vm7, %v1880_v27  ;;  %vm268_vm12 = vcmp.lt.s32.totalorder %v250_v31, %v1916_v3  ;;  %v549_v39 = vsel %vm2609_vm0, %v521_v34, 0.0  ;;  %v524_v42 = vmul.f32 %v1991_v38, %v1991_v38  ;;  %2632 = vst [vmem:[#allocation5_spill] sm:$0xff] %v2006_v44  ;;  %v525_v46 = vmul.f32 %v2002_v43, %v2002_v43 }
  0x1a   : > { %1679 = vmatmul.mubr.msk.f32.gmra.mrb[2].mxu0 %vm2609_vm0, %v212_v10  ;;  %535 = vadd.xlane.f32.xlu0 %v534_v23  ;;  %v552_v41 = vsel %vm2609_vm0, %v522_v36, 0.0  ;;  %vm1561_vm13 = vmpackc.low %vm268_vm12, %vm267_vm11  ;;  %v555_v45 = vsel %vm2609_vm0, %v523_v40, 0.0  ;;  %v526_v48 = vmul.f32 %v2006_v44, %v2006_v44  ;;  %2633 = vst [vmem:[#allocation6_spill] sm:$0xff] %v2019_v49  ;;  %v251_v50 = vadd.s32 64, %v1911_v1 }
  0x1b   : > { %1681 = vmatprep.mubr.msk.f32.mxu0 %vm2609_vm0, %v213_v20  ;;  %541 = vadd.xlane.f32.xlu1 %v540_v25  ;;  %v558_v47 = vsel %vm2609_vm0, %v524_v42, 0.0  ;;  %v252_v51 = vadd.s32 72, %v1911_v1  ;;  %2634 = vst [vmem:[#allocation7_spill] sm:$0xff] %v2026_v52  ;;  %v561_v53 = vsel %vm2609_vm0, %v525_v46, 0.0  ;;  %v527_v54 = vmul.f32 %v2019_v49, %v2019_v49  ;;  %2637 = vst [vmem:[#allocation8_spill] sm:$0xff] %v2043_v58 }
  0x1c   : > { %1702 = vmatpush3.bf16.msk.msra.mxu1 %vm1961_vm7, %v1880_v27  ;;  %v564_v55 = vsel %vm2609_vm0, %v526_v48, 0.0  ;;  %v528_v56 = vmul.f32 %v2026_v52, %v2026_v52  ;;  %vm269_vm14 = vcmp.lt.s32.totalorder %v251_v50, %v1916_v3  ;;  %v253_v59 = vadd.s32 80, %v1911_v1  ;;  %2638 = vst [vmem:[#allocation9_spill] sm:$0xff] %v2050_v61 }
  0x1d   : > { %1703 = vmatprep.subr.msk.bf16.mxu1 %vm1559_vm10, %v1880_v27  ;;  %vm270_vm15 = vcmp.lt.s32.totalorder %v252_v51, %v1916_v3  ;;  %v254_v60 = vadd.s32 88, %v1911_v1  ;;  %v567_v62 = vsel %vm2609_vm0, %v527_v54, 0.0  ;;  %v529_v63 = vmul.f32 %v2043_v58, %v2043_v58 }
  0x1e   : > { %1682 = vmatmul.mubr.msk.f32.gmra.mrb[4].mxu0 %vm2609_vm0, %v214_v22  ;;  %544 = vadd.xlane.f32.xlu0 %v543_v33  ;;  %vm2036_vm1 = vmpackc.low %vm270_vm15, %vm269_vm14  ;;  %v570_v0 = vsel %vm2609_vm0, %v528_v56, 0.0  ;;  %v530_v2 = vmul.f32 %v2050_v61, %v2050_v61  ;;  %vm271_vm2 = vcmp.lt.s32.totalorder %v253_v59, %v1916_v3  ;;  %v255_v6 = vadd.s32 96, %v1911_v1 }
  0x1f   : > { %1684 = vmatprep.mubr.msk.f32.mxu0 %vm2609_vm0, %v215_v29  ;;  %547 = vadd.xlane.f32.xlu1 %v546_v35  ;;  %vm272_vm3 = vcmp.lt.s32.totalorder %v254_v60, %v1916_v3  ;;  %v573_v4 = vsel %vm2609_vm0, %v529_v63, 0.0  ;;  %v256_v7 = vadd.s32 104, %v1911_v1  ;;  %v257_v8 = vadd.s32 112, %v1911_v1 }
  0x20   : > { %1704 = vmatpush3.bf16.msk.msra.mxu1 %vm1559_vm10, %v1880_v27  ;;  %vm1565_vm4 = vmpackc.low %vm272_vm3, %vm271_vm2  ;;  %v576_v5 = vsel %vm2609_vm0, %v530_v2, 0.0  ;;  %vm273_vm5 = vcmp.lt.s32.totalorder %v255_v6, %v1916_v3  ;;  %v258_v9 = vadd.s32 120, %v1911_v1  ;;  %v581_v10 = vrot.slane %v1943_v19, 4 }
  0x21   : > { %1705 = vmatprep.subr.msk.bf16.mxu1 %vm1561_vm13, %v1880_v27  ;;  %vm274_vm6 = vcmp.lt.s32.totalorder %v256_v7, %v1916_v3  ;;  %vm275_vm8 = vcmp.lt.s32.totalorder %v257_v8, %v1916_v3 }
  0x22   : > { %1685 = vmatmul.mubr.msk.f32.gmra.mrb[6].mxu0 %vm2609_vm0, %v1973_v32  ;;  %550 = vadd.xlane.f32.xlu0 %v549_v39  ;;  %vm1567_vm7 = vmpackc.low %vm274_vm6, %vm273_vm5  ;;  %vm276_vm9 = vcmp.lt.s32.totalorder %v258_v9, %v1916_v3  ;;  %v582_v12 = vadd.f32 %v581_v10, %v1943_v19 }
  0x23   : > { %1687 = vmatprep.mubr.msk.f32.mxu0 %vm2609_vm0, %v217_v37  ;;  %553 = vadd.xlane.f32.xlu1 %v552_v41  ;;  %vm1569_vm10 = vmpackc.low %vm276_vm9, %vm275_vm8 }
  0x24   : > { %1706 = vmatpush3.bf16.msk.msra.mxu1 %vm1561_vm13, %v1880_v27  ;;  %v583_v14 = vrot.slane %v582_v12, 2 }
  0x25   : > { %1707 = vmatprep.subr.msk.bf16.mxu1 %vm2036_vm1, %v1880_v27 }
  0x26   : > { %1688 = vmatmul.mubr.msk.f32.gmra.mrb[8].mxu0 %vm2609_vm0, %v1991_v38  ;;  %556 = vadd.xlane.f32.xlu0 %v555_v45  ;;  %v584_v1 = vadd.f32 %v583_v14, %v582_v12 }
  0x27   : > { %1690 = vmatprep.mubr.msk.f32.mxu0 %vm2609_vm0, %v2002_v43  ;;  %559 = vadd.xlane.f32.xlu1 %v558_v47 }
  0x28   : > { %1708 = vmatpush3.bf16.msk.msra.mxu1 %vm2036_vm1, %v1880_v27  ;;  %v585_v18 = vrot.slane %v584_v1, 1 }
  0x29   : > { %1709 = vmatprep.subr.msk.bf16.mxu1 %vm1565_vm4, %v1880_v27 }
  0x2a   : > { %1691 = vmatmul.mubr.msk.f32.gmra.mrb[10].mxu0 %vm2609_vm0, %v2006_v44  ;;  %562 = vadd.xlane.f32.xlu0 %v561_v53  ;;  %v586_v21 = vadd.f32 %v585_v18, %v584_v1 }
  0x2b   : > { %1693 = vmatprep.mubr.msk.f32.mxu0 %vm2609_vm0, %v2019_v49  ;;  %565 = vadd.xlane.f32.xlu1 %v564_v55 }
  0x2c   : > { %1710 = vmatpush3.bf16.msk.msra.mxu1 %vm1565_vm4, %v1880_v27  ;;  %v2090_v25 = vmul.f32 0.5, %v586_v21 }
  0x2d   : > { %1711 = vmatprep.subr.msk.bf16.mxu1 %vm1567_vm7, %v1880_v27 }
  0x2e   : > { %1694 = vmatmul.mubr.msk.f32.gmra.mrb[12].mxu0 %vm2609_vm0, %v2026_v52  ;;  %568 = vadd.xlane.f32.xlu0 %v567_v62 }
  0x2f   : > { %1696 = vmatprep.mubr.msk.f32.mxu0 %vm2609_vm0, %v2043_v58  ;;  %571 = vadd.xlane.f32.xlu1 %v570_v0 }
  0x30   : > { %1712 = vmatpush3.bf16.msk.msra.mxu1 %vm1567_vm7, %v1880_v27 }
  0x31   : > { %1713 = vmatprep.subr.msk.bf16.mxu1 %vm1569_vm10, %v1880_v27 }
  0x32   : > { %1697 = vmatmul.mubr.msk.f32.gmra.mrb[14].mxu0 %vm2609_vm0, %v2050_v61  ;;  %574 = vadd.xlane.f32.xlu0 %v573_v4 }
  0x33   : > { %577 = vadd.xlane.f32.xlu1 %v576_v5 }
  0x34   : > { %1714 = vmatpush3.bf16.msk.msra.mxu1 %vm1569_vm10, %v1880_v27 }
  0xa3   : > { %v533_v13 = vpop.xlane.xlu0 %532 }
  0xa4   : > { %v539_v11 = vpop.xlane.xlu1 %538  ;;  %v587_v22 = vmul.f32 0.5, %v533_v13 }
  0xa5   : > { %v589_v30 = vmul.f32 0.5, %v539_v11 }
  0xa6   : > { %v1523_v29 = vadd.f32 -0.005, %v587_v22 }
  0xa7   : > { %v536_v16 = vpop.xlane.xlu0 %535  ;;  %v1525_v39 = vadd.f32 -0.005, %v589_v30 }
  0xa8   : > { %v542_v15 = vpop.xlane.xlu1 %541  ;;  %v588_v3 = vmul.f32 0.5, %v536_v16  ;;  %v2096_v36 = vadd.f32 %v1523_v29, %v2090_v25 }
  0xa9   : > { %v590_v28 = vmul.f32 0.5, %v542_v15  ;;  %v2119_v54 = vadd.f32 %v1525_v39, %v2090_v25 }
  0xaa   : > { %v1524_v26 = vadd.f32 -0.005, %v588_v3 }
  0xab   : > { %v545_v20 = vpop.xlane.xlu0 %544  ;;  %v1526_v31 = vadd.f32 -0.005, %v590_v28 }
  0xac   : > { %v548_v17 = vpop.xlane.xlu1 %547  ;;  %v2093_v33 = vadd.f32 %v1524_v26, %v2090_v25  ;;  %v591_v37 = vmul.f32 0.5, %v545_v20 }
  0xad   : > { %v592_v34 = vmul.f32 0.5, %v548_v17  ;;  %v2105_v45 = vadd.f32 %v1526_v31, %v2090_v25 }
  0xae   : > { %v1527_v47 = vadd.f32 -0.005, %v591_v37 }
  0xaf   : > { %v551_v24 = vpop.xlane.xlu0 %550  ;;  %v1528_v42 = vadd.f32 -0.005, %v592_v34 }
  0xb0   : > { %v554_v23 = vpop.xlane.xlu1 %553  ;;  %v593_v48 = vmul.f32 0.5, %v551_v24  ;;  %v2131_v63 = vadd.f32 %v1527_v47, %v2090_v25 }
  0xb1   : > { %v594_v46 = vmul.f32 0.5, %v554_v23  ;;  %v2126_v57 = vadd.f32 %v1528_v42, %v2090_v25 }
  0xb2   : > { %v1529_v60 = vadd.f32 -0.005, %v593_v48 }
  0xb3   : > { %v557_v35 = vpop.xlane.xlu0 %556  ;;  %v1530_v56 = vadd.f32 -0.005, %v594_v46 }
  0xb4   : > { %v560_v19 = vpop.xlane.xlu1 %559  ;;  %v595_v62 = vmul.f32 0.5, %v557_v35  ;;  %v2152_v10 = vadd.f32 %v1529_v60, %v2090_v25 }
  0xb5   : > { %v596_v59 = vmul.f32 0.5, %v560_v19  ;;  %v2147_v6 = vadd.f32 %v1530_v56, %v2090_v25  ;;  %v225_v56 = vld [vmem:[%s2264_s24] sm:$0xff] }
  0xb6   : > { %v1531_v9 = vadd.f32 -0.005, %v595_v62  ;;  %v228_v62 = vld [vmem:[%s2264_s24 + $0x18] sm:$0xff] }
  0xb7   : > { %v563_v51 = vpop.xlane.xlu0 %562  ;;  %v1532_v4 = vadd.f32 -0.005, %v596_v59  ;;  %v226_v59 = vld [vmem:[%s2264_s24 + $0x8] sm:$0xff] }
  0xb8   : > { %v566_v50 = vpop.xlane.xlu1 %565  ;;  %v597_v11 = vmul.f32 0.5, %v563_v51  ;;  %v2173_v18 = vadd.f32 %v1531_v9, %v2090_v25  ;;  %v1787_v60 = vpack.c.bf16 %v226_v59, %v225_v56  ;;  %v231_v9 = vld [vmem:[%s2264_s24 + $0x30] sm:$0xff] }
  0xb9   : > { %v598_v7 = vmul.f32 0.5, %v566_v50  ;;  %v2168_v15 = vadd.f32 %v1532_v4, %v2090_v25  ;;  %v229_v4 = vld [vmem:[%s2264_s24 + $0x20] sm:$0xff] }
  0xba   : > { %v1533_v16 = vadd.f32 -0.005, %v597_v11  ;;  %1788 = vmatprep.subr.bf16.mxu0 %v1787_v60  ;;  %v232_v11 = vld [vmem:[%s2264_s24 + $0x38] sm:$0xff] }
  0xbb   : > { %v569_v8 = vpop.xlane.xlu0 %568  ;;  %v1534_v14 = vadd.f32 -0.005, %v598_v7  ;;  %v230_v7 = vld [vmem:[%s2264_s24 + $0x28] sm:$0xff]  ;;  %1790 = vmatpush3.bf16.msra.mxu0 %v1787_v60 }
  0xbc   : > { %v572_v2 = vpop.xlane.xlu1 %571  ;;  %v599_v17 = vmul.f32 0.5, %v569_v8  ;;  %v2194_v29 = vadd.f32 %v1533_v16, %v2090_v25  ;;  %v1795_v8 = vpack.c.bf16 %v230_v7, %v229_v4  ;;  %v234_v16 = vld [vmem:[%s2264_s24 + $0x48] sm:$0xff]  ;;  %v236_v4 = vld [vmem:[%s2264_s24 + $0x58] sm:$0xff] }
  0xbd   : > { %v600_v1 = vmul.f32 0.5, %v572_v2  ;;  %v2189_v24 = vadd.f32 %v1534_v14, %v2090_v25  ;;  %v1799_v14 = vpack.c.bf16 %v232_v11, %v231_v9 }
  0xbe   : > { %v1535_v28 = vadd.f32 -0.005, %v599_v17 }
  0xbf   : > { %v575_v21 = vpop.xlane.xlu0 %574  ;;  %v1536_v22 = vadd.f32 -0.005, %v600_v1  ;;  %v233_v1 = vld [vmem:[%s2264_s24 + $0x40] sm:$0xff] }
  0xc0   : > { %v578_v20 = vpop.xlane.xlu1 %577  ;;  %v601_v30 = vmul.f32 0.5, %v575_v21  ;;  %v2215_v39 = vadd.f32 %v1535_v28, %v2090_v25  ;;  %v1803_v17 = vpack.c.bf16 %v234_v16, %v233_v1 }
  0xc1   : > { %v602_v26 = vmul.f32 0.5, %v578_v20  ;;  %v2210_v35 = vadd.f32 %v1536_v22, %v2090_v25  ;;  %v1882_v20 = vmov 0.0  }
  0xc2   : > { %v1537_v37 = vadd.f32 -0.005, %v601_v30 }
  0xc3   : > { %v1538_v34 = vadd.f32 -0.005, %v602_v26  ;;  %2639 = vst [vmem:[#allocation10_spill] sm:$0xff] %v2210_v35 }
  0xc4   : > { %v2236_v48 = vadd.f32 %v1537_v37, %v2090_v25 }
  0xc5   : > { %v2231_v47 = vadd.f32 %v1538_v34, %v2090_v25  ;;  %v1881_v25 = vmov 127  }
  0xc6   : > { %1831 = vset.pattern.permute.xlu1 %v1881_v25  ;;  %1830 = vset.pattern.permute.xlu0 %v1881_v25 }
  0xc7   : > { %2640 = vst [vmem:[#allocation11_spill] sm:$0xff] %v2231_v47 }
  0xe9   : > { %v2098_v40 = vpop.f32.mrb[0].mxu0 }
  0xea   : > { %vm637_vm11 = vcmp.ge.f32.partialorder %v2098_v40, %v2093_v33  ;;  %v2102_v41 = vpop.f32.mrb[1].mxu0 }
  0xeb   : > { %vm636_vm12 = vcmp.ge.f32.partialorder %v2102_v41, %v2096_v36  ;;  %v1540_v60 = vsel %vm637_vm11, 1.0, %v1882_v20 }
  0xec   : > { %vm1571_vm13 = vmpackc.low %vm637_vm11, %vm636_vm12  ;;  %v1539_v26 = vsel %vm636_vm12, 1.0, %v1882_v20 }
  0xed   : > { %v2115_v53 = vpop.f32.mrb[2].mxu0  ;;  %1715 = vmatprep.mubr.msk.bf16.mxu1 %vm1571_vm13, %v1880_v27 }
  0xee   : > { %vm639_vm14 = vcmp.ge.f32.partialorder %v2115_v53, %v2105_v45  ;;  %v2123_v55 = vpop.f32.mrb[3].mxu0 }
  0xef   : > { %vm638_vm15 = vcmp.ge.f32.partialorder %v2123_v55, %v2119_v54  ;;  %v1542_v34 = vsel %vm639_vm14, 1.0, %v1882_v20 }
  0xf0   : > { %vm1573_vm1 = vmpackc.low %vm639_vm14, %vm638_vm15  ;;  %v1541_v21 = vsel %vm638_vm15, 1.0, %v1882_v20 }
  0xf1   : > { %1716 = vmatmul.mubr.msk.bf16.vlgmr.msra.gmra.mrb[0].mxu1 %vm1573_vm1, %v1880_v27  ;;  %v2140_v0 = vpop.f32.mrb[4].mxu0 }
  0xf2   : > { %vm641_vm2 = vcmp.ge.f32.partialorder %v2140_v0, %v2126_v57  ;;  %v2144_v5 = vpop.f32.mrb[5].mxu0 }
  0xf3   : > { %vm640_vm3 = vcmp.ge.f32.partialorder %v2144_v5, %v2131_v63 }
  0xf4   : > { %vm1575_vm4 = vmpackc.low %vm641_vm2, %vm640_vm3 }
  0xf5   : > { %v2160_v12 = vpop.f32.mrb[6].mxu0  ;;  %1719 = vmatprep.mubr.msk.bf16.mxu1 %vm1575_vm4, %v1880_v27 }
  0xf6   : > { %vm643_vm5 = vcmp.ge.f32.partialorder %v2160_v12, %v2147_v6  ;;  %v2165_v13 = vpop.f32.mrb[7].mxu0 }
  0xf7   : > { %vm642_vm6 = vcmp.ge.f32.partialorder %v2165_v13, %v2152_v10 }
  0xf8   : > { %vm1577_vm7 = vmpackc.low %vm643_vm5, %vm642_vm6  ;;  %v1545_v1 = vsel %vm642_vm6, 1.0, %v1882_v20 }
  0xf9   : > { %1720 = vmatmul.mubr.msk.bf16.gmra.mrb[4].mxu1 %vm1577_vm7, %v1880_v27  ;;  %v2182_v3 = vpop.f32.mrb[8].mxu0 }
  0xfa   : > { %vm645_vm8 = vcmp.ge.f32.partialorder %v2182_v3, %v2168_v15  ;;  %v2186_v23 = vpop.f32.mrb[9].mxu0 }
  0xfb   : > { %vm2611_vm9 = vcmp.ge.f32.partialorder %v2186_v23, %v2173_v18 }
  0xfc   : > { %vm1579_vm10 = vmpackc.low %vm645_vm8, %vm2611_vm9 }
  0xfd   : > { %v2202_v19 = vpop.f32.mrb[10].mxu0  ;;  %1723 = vmatprep.mubr.msk.bf16.mxu1 %vm1579_vm10, %v1880_v27 }
  0xfe   : > { %vm647_vm13 = vcmp.ge.f32.partialorder %v2202_v19, %v2189_v24  ;;  %v2207_v31 = vpop.f32.mrb[11].mxu0  ;;  %v2647_v24 = vld [vmem:[#allocation10_spill] sm:$0xff] }
  0xff   : > { %vm2610_vm1 = vcmp.ge.f32.partialorder %v2207_v31, %v2194_v29 }
 0x100   : > { %vm1581_vm4 = vmpackc.low %vm647_vm13, %vm2610_vm1 }
 0x101   : > { %1724 = vmatmul.mubr.msk.bf16.gmra.mrb[8].mxu1 %vm1581_vm4, %v1880_v27  ;;  %v2224_v42 = vpop.f32.mrb[12].mxu0 }
 0x102   : > { %vm2625_vm7 = vcmp.ge.f32.partialorder %v2224_v42, %v2210_v35  ;;  %v2228_v46 = vpop.f32.mrb[13].mxu0 }
 0x103   : > { %vm2626_vm10 = vcmp.ge.f32.partialorder %v2228_v46, %v2215_v39 }
 0x104   : > { %vm1583_vm4 = vmpackc.low %vm2625_vm7, %vm2626_vm10  ;;  %v1551_v38 = vsel %vm2626_vm10, 1.0, %v1882_v20 }
 0x105   : > { %v2244_v50 = vpop.f32.mrb[14].mxu0  ;;  %1727 = vmatprep.mubr.msk.bf16.mxu1 %vm1583_vm4, %v1880_v27  ;;  %vm2643_vm4 = vcmp.ge.f32.partialorder %v2207_v31, %v2194_v29 }
 0x106   : > { %2641 = vst [vmem:[#allocation12_spill] sm:$0xff] %v2244_v50  ;;  %vm2623_vm0 = vcmp.ge.f32.partialorder %v2244_v50, %v2231_v47  ;;  %v2249_v51 = vpop.f32.mrb[15].mxu0 }
 0x107   : > { %vm2624_vm1 = vcmp.ge.f32.partialorder %v2249_v51, %v2236_v48 }
 0x108   : > { %vm1585_vm9 = vmpackc.low %vm2623_vm0, %vm2624_vm1 }
 0x109   : > { %1728 = vmatmul.mubr.msk.bf16.gmra.mrb[12].mxu1 %vm1585_vm9, %v1880_v27  ;;  %v227_v27 = vld [vmem:[%s2264_s24 + $0x10] sm:$0xff]  ;;  %vm2642_vm9 = vcmp.ge.f32.partialorder %v2186_v23, %v2173_v18 }
 0x10a   : > { %v1791_v2 = vpack.c.bf16 %v228_v62, %v227_v27 }
 0x10c   : > { %1792 = vmatprep.subr.bf16.mxu0 %v1791_v2 }
 0x10d   : > { %1794 = vmatpush3.bf16.msra.mxu0 %v1791_v2  ;;  %v235_v2 = vld [vmem:[%s2264_s24 + $0x50] sm:$0xff] }
 0x10e   : > { %1796 = vmatprep.subr.bf16.mxu0 %v1795_v8  ;;  %v1807_v11 = vpack.c.bf16 %v236_v4, %v235_v2 }
 0x111   : > { %1798 = vmatpush3.bf16.msra.mxu0 %v1795_v8 }
 0x112   : > { %1800 = vmatprep.subr.bf16.mxu0 %v1799_v14 }
 0x115   : > { %1802 = vmatpush3.bf16.msra.mxu0 %v1799_v14 }
 0x116   : > { %1804 = vmatprep.subr.bf16.mxu0 %v1803_v17 }
 0x119   : > { %1806 = vmatpush3.bf16.msra.mxu0 %v1803_v17 }
 0x11a   : > { %1808 = vmatprep.subr.bf16.mxu0 %v1807_v11 }
 0x11d   : > { %1810 = vmatpush3.bf16.msra.mxu0 %v1807_v11  ;;  %v1544_v11 = vsel %vm641_vm2, 1.0, %v1882_v20 }
 0x1c4   : > { %v2280_v22 = vpop.f32.mrb[0].mxu1 }
 0x1c5   : > { %v791_v28 = vadd.f32 %v2280_v22, %v1541_v21  ;;  %v2287_v30 = vpop.f32.mrb[1].mxu1  ;;  %vm839_vm10 = vcmp.lt.f32.partialorder %v2280_v22, 15.5 }
 0x1c6   : > { %v789_v37 = vadd.f32 %v1539_v26, %v2287_v30  ;;  %v2294_v25 = vpop.f32.mrb[2].mxu1  ;;  %v855_v36 = vsel %vm839_vm10, 1.0, %v1882_v20 }
 0x1c7   : > { %v807_v56 = vsub.f32 16.0, %v791_v28  ;;  %v792_v59 = vadd.f32 %v2294_v25, %v1542_v34  ;;  %v2297_v27 = vpop.f32.mrb[3].mxu1 }
 0x1c8   : > { %v805_v62 = vsub.f32 16.0, %v789_v37  ;;  %v790_v8 = vadd.f32 %v1540_v60, %v2297_v27  ;;  %v1543_v60 = vsel %vm640_vm3, 1.0, %v1882_v20 }
 0x1c9   : > { %v808_v7 = vsub.f32 16.0, %v792_v59  ;;  %v823_v9 = vmax.f32 %v807_v56, 0.0  ;;  %v237_v56 = vld [vmem:[%s2264_s24 + $0x60] sm:$0xff]  ;;  %v238_v59 = vld [vmem:[%s2264_s24 + $0x68] sm:$0xff] }
 0x1ca   : > { %v821_v14 = vmax.f32 %v805_v62, 0.0  ;;  %v806_v17 = vsub.f32 16.0, %v790_v8  ;;  %v1811_v62 = vpack.c.bf16 %v238_v59, %v237_v56 }
 0x1cb   : > { %913 = vperm.xlu1 %1831, %v823_v9   ;;  %v824_v28 = vmax.f32 %v808_v7, 0.0  ;;  %v239_v7 = vld [vmem:[%s2264_s24 + $0x70] sm:$0xff]  ;;  %v240_v9 = vld [vmem:[%s2264_s24 + $0x78] sm:$0xff] }
 0x1cc   : > { %903 = vperm.xlu0 %1830, %v821_v14   ;;  %v2310_v16 = vpop.f32.mrb[4].mxu1  ;;  %v822_v8 = vmax.f32 %v806_v17, 0.0  ;;  %1812 = vmatprep.subr.bf16.mxu0 %v1811_v62 }
 0x1cd   : > { %v795_v21 = vadd.f32 %v2310_v16, %v1545_v1  ;;  %v2313_v26 = vpop.f32.mrb[5].mxu1  ;;  %1814 = vmatpush3.bf16.msra.mxu0 %v1811_v62  ;;  %v1815_v1 = vpack.c.bf16 %v240_v9, %v239_v7  ;;  %v1550_v62 = vsel %vm647_vm13, 1.0, %v1882_v20 }
 0x1ce   : > { %v2315_v34 = vpop.f32.mrb[6].mxu1  ;;  %v793_v4 = vadd.f32 %v1543_v60, %v2313_v26  ;;  %v1548_v60 = vsel %vm645_vm8, 1.0, %v1882_v20 }
 0x1cf   : > { %918 = vperm.xlu1 %1831, %v824_v28   ;;  %v2317_v37 = vpop.f32.mrb[7].mxu1  ;;  %v811_v2 = vsub.f32 16.0, %v795_v21  ;;  %1816 = vmatprep.subr.bf16.mxu0 %v1815_v1  ;;  %vm844_vm10 = vcmp.lt.f32.partialorder %v2315_v34, 15.5 }
 0x1d0   : > { %v809_v28 = vsub.f32 16.0, %v793_v4  ;;  %v794_v56 = vadd.f32 %v1544_v11, %v2317_v37  ;;  %v860_v63 = vsel %vm844_vm10, 1.0, %v1882_v20 }
 0x1d1   : > { %v827_v59 = vmax.f32 %v811_v2, 0.0  ;;  %1818 = vmatpush3.bf16.msra.mxu0 %v1815_v1  ;;  %v1546_v2 = vsel %vm643_vm5, 1.0, %v1882_v20  ;;  %v1547_v1 = vsel %vm2642_vm9, 1.0, %v1882_v20  ;;  %vm869_vm9 = vcmp.lt.f32.partialorder %v2287_v30, 0.5 }
 0x1d2   : > { %v796_v9 = vadd.f32 %v2315_v34, %v1546_v2  ;;  %v810_v11 = vsub.f32 16.0, %v794_v56  ;;  %v825_v58 = vmax.f32 %v809_v28, 0.0 }
 0x1d3   : > { %908 = vperm.xlu1 %1831, %v822_v8  }
 0x1d4   : > { %v2332_v14 = vpop.f32.mrb[8].mxu1  ;;  %v812_v43 = vsub.f32 16.0, %v796_v9 }
 0x1d5   : > { %v2335_v21 = vpop.f32.mrb[9].mxu1 }
 0x1d6   : > { %v2337_v17 = vpop.f32.mrb[10].mxu1 }
 0x1d7   : > { %933 = vperm.xlu1 %1831, %v827_v59   ;;  %v2347_v4 = vpop.f32.mrb[11].mxu1  ;;  %v800_v8 = vadd.f32 %v2337_v17, %v1550_v62  ;;  %v797_v62 = vadd.f32 %v1547_v1, %v2335_v21  ;;  %v828_v1 = vmax.f32 %v812_v43, 0.0  ;;  %v1553_v43 = vsel %vm2624_vm1, 1.0, %v1882_v20 }
 0x1d8   : > { %v798_v7 = vadd.f32 %v1548_v60, %v2347_v4  ;;  %v826_v60 = vmax.f32 %v810_v11, 0.0  ;;  %vm870_vm1 = vcmp.lt.f32.partialorder %v2297_v27, 0.5 }
 0x1d9   : > { %v816_v59 = vsub.f32 16.0, %v800_v8  ;;  %v813_v11 = vsub.f32 16.0, %v797_v62 }
 0x1da   : > { %v814_v61 = vsub.f32 16.0, %v798_v7 }
 0x1db   : > { %923 = vperm.xlu1 %1831, %v825_v58   ;;  %v1554_v58 = vsel %vm2623_vm0, 1.0, %v1882_v20  ;;  %v832_v7 = vmax.f32 %v816_v59, 0.0  ;;  %v829_v35 = vmax.f32 %v813_v11, 0.0  ;;  %vm871_vm0 = vcmp.lt.f32.partialorder %v2280_v22, 0.5 }
 0x1dc   : > { %v2360_v49 = vpop.f32.mrb[12].mxu1  ;;  %v830_v52 = vmax.f32 %v814_v61, 0.0  ;;  %v1552_v61 = vsel %vm2625_vm7, 1.0, %v1882_v20  ;;  %vm838_vm7 = vcmp.lt.f32.partialorder %v2297_v27, 15.5 }
 0x1dd   : > { %v2363_v44 = vpop.f32.mrb[13].mxu1  ;;  %v803_v62 = vadd.f32 %v2360_v49, %v1553_v43 }
 0x1de   : > { %948 = vperm.xlu0 %1830, %v830_v52   ;;  %v2365_v56 = vpop.f32.mrb[14].mxu1  ;;  %v1549_v52 = vsel %vm2643_vm4, 1.0, %v1882_v20  ;;  %vm837_vm4 = vcmp.lt.f32.partialorder %v2287_v30, 15.5  ;;  %v887_v30 = vsel %vm871_vm0, 1.0, %v1882_v20  ;;  %vm873_vm0 = vcmp.lt.f32.partialorder %v2313_v26, 0.5 }
 0x1df   : > { %928 = vperm.xlu1 %1831, %v826_v60   ;;  %v2375_v28 = vpop.f32.mrb[15].mxu1  ;;  %v804_v2 = vadd.f32 %v2365_v56, %v1554_v58  ;;  %v799_v9 = vadd.f32 %v2332_v14, %v1549_v52  ;;  %v801_v58 = vadd.f32 %v1551_v38, %v2363_v44 }
 0x1e0   : > { %v802_v8 = vadd.f32 %v1552_v61, %v2375_v28  ;;  %vm850_vm10 = vcmp.lt.f32.partialorder %v2375_v28, 15.5 }
 0x1e1   : > { %v820_v32 = vsub.f32 16.0, %v804_v2  ;;  %v815_v50 = vsub.f32 16.0, %v799_v9  ;;  %v817_v61 = vsub.f32 16.0, %v801_v58  ;;  %v819_v2 = vsub.f32 16.0, %v803_v62 }
 0x1e2   : > { %v818_v60 = vsub.f32 16.0, %v802_v8  ;;  %958 = vperm.xlu0 %1830, %v832_v7   ;;  %v853_v9 = vsel %vm837_vm4, 1.0, %v1882_v20  ;;  %v854_v62 = vsel %vm838_vm7, 1.0, %v1882_v20  ;;  %vm840_vm4 = vcmp.lt.f32.partialorder %v2294_v25, 15.5 }
 0x1e3   : > { %938 = vperm.xlu1 %1831, %v828_v1   ;;  %v836_v59 = vmax.f32 %v820_v32, 0.0  ;;  %v831_v52 = vmax.f32 %v815_v50, 0.0  ;;  %v833_v8 = vmax.f32 %v817_v61, 0.0  ;;  %v835_v7 = vmax.f32 %v819_v2, 0.0 }
 0x1e4   : > { %v834_v47 = vmax.f32 %v818_v60, 0.0  ;;  %v886_v60 = vsel %vm870_vm1, 1.0, %v1882_v20  ;;  %v856_v22 = vsel %vm840_vm4, 1.0, %v1882_v20  ;;  %vm875_vm1 = vcmp.lt.f32.partialorder %v2310_v16, 0.5 }
 0x1e5   : > { %v889_v2 = vsel %vm873_vm0, 1.0, %v1882_v20  ;;  %vm842_vm7 = vcmp.lt.f32.partialorder %v2317_v37, 15.5  ;;  %v891_v40 = vsel %vm875_vm1, 1.0, %v1882_v20  ;;  %vm845_vm4 = vcmp.lt.f32.partialorder %v2335_v21, 15.5 }
 0x1e6   : > { %968 = vperm.xlu0 %1830, %v834_v47   ;;  %v858_v45 = vsel %vm842_vm7, 1.0, %v1882_v20  ;;  %vm846_vm0 = vcmp.lt.f32.partialorder %v2347_v4, 15.5  ;;  %v861_v10 = vsel %vm845_vm4, 1.0, %v1882_v20  ;;  %vm848_vm1 = vcmp.lt.f32.partialorder %v2337_v17, 15.5 }
 0x1e7   : > { %943 = vperm.xlu1 %1831, %v829_v35   ;;  %v885_v35 = vsel %vm869_vm9, 1.0, %v1882_v20  ;;  %vm872_vm9 = vcmp.lt.f32.partialorder %v2294_v25, 0.5  ;;  %v862_v13 = vsel %vm846_vm0, 1.0, %v1882_v20  ;;  %vm881_vm7 = vcmp.lt.f32.partialorder %v2363_v44, 0.5 }
 0x1e8   : > { %v866_v15 = vsel %vm850_vm10, 1.0, %v1882_v20  ;;  %vm852_vm4 = vcmp.lt.f32.partialorder %v2365_v56, 15.5  ;;  %vm2648_vm0 = vcmp.ge.f32.partialorder %v2224_v42, %v2647_v24  ;;  %v2664_v24 = vld [vmem:[#allocation4_spill] sm:$0xff] }
 0x1e9   : > { %v868_v19 = vsel %vm852_vm4, 1.0, %v1882_v20 }
 0x1ea   : > { %978 = vperm.xlu0 %1830, %v836_v59   ;;  %v888_v59 = vsel %vm872_vm9, 1.0, %v1882_v20  ;;  %vm878_vm9 = vcmp.lt.f32.partialorder %v2347_v4, 0.5 }
 0x1eb   : > { %953 = vperm.xlu1 %1831, %v831_v52   ;;  %v894_v5 = vsel %vm878_vm9, 1.0, %v1882_v20  ;;  %vm2645_vm9 = vcmp.ge.f32.partialorder %v2207_v31, %v2194_v29 }
 0x1ef   : > { %963 = vperm.xlu1 %1831, %v833_v8  }
 0x1f3   : > { %973 = vperm.xlu1 %1831, %v835_v7  }
 0x24a   : > { %v914_v38 = vpop.permute.xlu1 %913 }
 0x24b   : > { %v904_v47 = vpop.permute.xlu0 %903  ;;  %v983_v1 = vmul.f32 %v914_v38, %v887_v30 }
 0x24c   : > { %v981_v32 = vmul.f32 %v904_v47, %v885_v35 }
 0x24d   : > { %v999_v61 = vadd.f32 %v983_v1, %v855_v36 }
 0x24e   : > { %v997_v50 = vadd.f32 %v981_v32, %v853_v9  ;;  %v919_v11 = vpop.permute.xlu1 %918 }
 0x24f   : > { %v984_v41 = vmul.f32 %v919_v11, %v888_v59 }
 0x250   : > { %1763 = vmatprep.mubr.msk.f32.mxu0 %vm636_vm12, %v997_v50  ;;  %vm841_vm12 = vcmp.lt.f32.partialorder %v2313_v26, 15.5 }
 0x251   : > { %v1000_v25 = vadd.f32 %v984_v41, %v856_v22  ;;  %v857_v33 = vsel %vm841_vm12, 1.0, %v1882_v20  ;;  %vm880_vm12 = vcmp.lt.f32.partialorder %v2337_v17, 0.5  ;;  %v864_v17 = vsel %vm848_vm1, 1.0, %v1882_v20 }
 0x252   : > { %v909_v58 = vpop.permute.xlu1 %908 }
 0x253   : > { %v982_v43 = vmul.f32 %v909_v58, %v886_v60 }
 0x255   : > { %v998_v27 = vadd.f32 %v982_v43, %v854_v62 }
 0x256   : > { %v934_v52 = vpop.permute.xlu1 %933 }
 0x257   : > { %1764 = vmatmul.mubr.msk.f32.vlgmr.msra.gmra.mrb[16].mxu0 %vm637_vm11, %v998_v27  ;;  %vm874_vm11 = vcmp.lt.f32.partialorder %v2317_v37, 0.5  ;;  %v987_v26 = vmul.f32 %v934_v52, %v891_v40  ;;  %v897_v27 = vsel %vm881_vm7, 1.0, %v1882_v20  ;;  %v1865_v40 = vld [vmem:[%s1922_s18] sm:$0xff] }
 0x258   : > { %1766 = vmatprep.mubr.msk.f32.mxu0 %vm638_vm15, %v999_v61  ;;  %vm843_vm15 = vcmp.lt.f32.partialorder %v2310_v16, 15.5  ;;  %v890_v38 = vsel %vm874_vm11, 1.0, %v1882_v20  ;;  %vm882_vm11 = vcmp.lt.f32.partialorder %v2375_v28, 0.5 }
 0x259   : > { %v859_v53 = vsel %vm843_vm15, 1.0, %v1882_v20  ;;  %vm849_vm15 = vcmp.lt.f32.partialorder %v2363_v44, 15.5  ;;  %v898_v36 = vsel %vm882_vm11, 1.0, %v1882_v20 }
 0x25a   : > { %v924_v8 = vpop.permute.xlu1 %923  ;;  %v1003_v32 = vadd.f32 %v987_v26, %v859_v53  ;;  %v865_v44 = vsel %vm849_vm15, 1.0, %v1882_v20 }
 0x25b   : > { %v985_v7 = vmul.f32 %v924_v8, %v889_v2  ;;  %1767 = vmatmul.mubr.msk.f32.gmra.mrb[18].mxu0 %vm639_vm14, %v1000_v25  ;;  %vm876_vm14 = vcmp.lt.f32.partialorder %v2315_v34, 0.5 }
 0x25c   : > { %v892_v16 = vsel %vm876_vm14, 1.0, %v1882_v20  ;;  %vm884_vm14 = vcmp.lt.f32.partialorder %v2365_v56, 0.5 }
 0x25d   : > { %v1001_v54 = vadd.f32 %v985_v7, %v857_v33  ;;  %v949_v55 = vpop.permute.xlu0 %948  ;;  %v900_v3 = vsel %vm884_vm14, 1.0, %v1882_v20  ;;  %v2650_v7 = vld [vmem:[#allocation12_spill] sm:$0xff]  ;;  %v2651_v33 = vld [vmem:[#allocation11_spill] sm:$0xff] }
 0x25e   : > { %v929_v35 = vpop.permute.xlu1 %928  ;;  %v990_v30 = vmul.f32 %v949_v55, %v894_v5 }
 0x25f   : > { %v986_v47 = vmul.f32 %v929_v35, %v890_v38  ;;  %1769 = vmatprep.mubr.msk.f32.mxu0 %vm640_vm3, %v1001_v54  ;;  %vm877_vm3 = vcmp.lt.f32.partialorder %v2335_v21, 0.5  ;;  %v896_v21 = vsel %vm880_vm12, 1.0, %v1882_v20  ;;  %vm2649_vm12 = vcmp.ge.f32.partialorder %v2249_v51, %v2236_v48  ;;  %v1866_v38 = vld [vmem:[%s1922_s18 + $0x18] sm:$0xff] }
 0x260   : > { %v893_v57 = vsel %vm877_vm3, 1.0, %v1882_v20  ;;  %v1006_v58 = vadd.f32 %v990_v30, %v862_v13  ;;  %vm851_vm3 = vcmp.lt.f32.partialorder %v2360_v49, 15.5  ;;  %v1174_v54 = vmul.f32 16.0, %v1865_v40  ;;  %v2666_v40 = vld [vmem:[#allocation7_spill] sm:$0xff] }
 0x261   : > { %v1002_v37 = vadd.f32 %v986_v47, %v858_v45  ;;  %v959_v50 = vpop.permute.xlu0 %958  ;;  %v1177_v35 = vmul.f32 16.0, %v1866_v38  ;;  %v1867_v47 = vld [vmem:[%s1922_s18 + $0x10] sm:$0xff] }
 0x262   : > { %v939_v9 = vpop.permute.xlu1 %938  ;;  %v992_v43 = vmul.f32 %v959_v50, %v896_v21  ;;  %v1176_v45 = vmul.f32 16.0, %v1867_v47 }
 0x263   : > { %v988_v11 = vmul.f32 %v939_v9, %v892_v16  ;;  %1770 = vmatmul.mubr.msk.f32.gmra.mrb[20].mxu0 %vm641_vm2, %v1002_v37  ;;  %vm879_vm2 = vcmp.lt.f32.partialorder %v2332_v14, 0.5 }
 0x264   : > { %1772 = vmatprep.mubr.msk.f32.mxu0 %vm642_vm6, %v1003_v32  ;;  %vm847_vm6 = vcmp.lt.f32.partialorder %v2332_v14, 15.5  ;;  %v895_v6 = vsel %vm879_vm2, 1.0, %v1882_v20  ;;  %vm2652_vm2 = vcmp.ge.f32.partialorder %v2650_v7, %v2651_v33 }
 0x265   : > { %v1004_v34 = vadd.f32 %v988_v11, %v860_v63  ;;  %v969_v4 = vpop.permute.xlu0 %968  ;;  %v863_v62 = vsel %vm847_vm6, 1.0, %v1882_v20  ;;  %vm2653_vm6 = vcmask 23552  }
 0x266   : > { %v944_v0 = vpop.permute.xlu1 %943  ;;  %v994_v41 = vmul.f32 %v969_v4, %v898_v36  ;;  %vm2654_vm1 = vmmov %vm2653_vm6  ;;  %v2657_v4 = vld [vmem:[#allocation2_spill] sm:$0xff] }
 0x267   : > { %v989_v1 = vmul.f32 %v944_v0, %v893_v57  ;;  %1773 = vmatmul.mubr.msk.f32.gmra.mrb[22].mxu0 %vm643_vm5, %v1004_v34  ;;  %vm2644_vm5 = vcmp.ge.f32.partialorder %v2186_v23, %v2173_v18  ;;  %v1008_v23 = vadd.f32 %v992_v43, %v864_v17  ;;  %vm2655_vm11 = vmmov %vm2654_vm1  ;;  %v1868_v34 = vld [vmem:[%s1922_s18 + $0x28] sm:$0xff]  ;;  %v1869_v0 = vld [vmem:[%s1922_s18 + $0x20] sm:$0xff] }
 0x268   : > { %v1010_v29 = vadd.f32 %v994_v41, %v866_v15  ;;  %v1179_v30 = vmul.f32 16.0, %v1868_v34  ;;  %v1870_v43 = vld [vmem:[%s1922_s18 + $0x30] sm:$0xff]  ;;  %vm2658_vm7 = vmmov %vm2654_vm1 }
 0x269   : > { %v1005_v60 = vadd.f32 %v989_v1, %v861_v10  ;;  %v979_v14 = vpop.permute.xlu0 %978  ;;  %v1178_v1 = vmul.f32 16.0, %v1869_v0  ;;  %vm2659_vm15 = vmmov %vm2654_vm1 }
 0x26a   : > { %v954_v12 = vpop.permute.xlu1 %953  ;;  %v996_v31 = vmul.f32 %v979_v14, %v900_v3  ;;  %vm2661_vm14 = vmmov %vm2654_vm1 }
 0x26b   : > { %v991_v59 = vmul.f32 %v954_v12, %v895_v6  ;;  %1775 = vmatprep.mubr.msk.f32.mxu0 %vm2644_vm5, %v1005_v60  ;;  %vm2656_vm5 = vmmov %vm2654_vm1  ;;  %v1181_v60 = vmul.f32 16.0, %v2657_v4  ;;  %v1180_v6 = vmul.f32 16.0, %v1870_v43 }
 0x26c   : > { %1776 = vmatmul.mubr.msk.f32.gmra.mrb[24].mxu0 %vm645_vm8, %v1006_v58  ;;  %vm883_vm8 = vcmp.lt.f32.partialorder %v2360_v49, 0.5  ;;  %v867_v49 = vsel %vm851_vm3, 1.0, %v1882_v20  ;;  %v1012_v8 = vadd.f32 %v996_v31, %v868_v19  ;;  %vm2662_vm10 = vmmov %vm2654_vm1  ;;  %v1184_v19 = vmul.f32 16.0, %v2664_v24 }
 0x26d   : > { %v1007_v18 = vadd.f32 %v991_v59, %v863_v62  ;;  %v899_v22 = vsel %vm883_vm8, 1.0, %v1882_v20  ;;  %vm2667_vm8 = vmmov %vm2654_vm1 }
 0x26e   : > { %v964_v61 = vpop.permute.xlu1 %963  ;;  %vm2669_vm3 = vmmov %vm2654_vm1 }
 0x26f   : > { %v993_v52 = vmul.f32 %v964_v61, %v897_v27  ;;  %1778 = vmatprep.mubr.msk.f32.mxu0 %vm2645_vm9, %v1007_v18  ;;  %v2660_v27 = vld [vmem:[#allocation3_spill] sm:$0xff]  ;;  %vm2665_vm9 = vmmov %vm2654_vm1 }
 0x270   : > { %1779 = vmatmul.mubr.msk.f32.gmra.mrb[26].mxu0 %vm647_vm13, %v1008_v23  ;;  %vm2646_vm13 = vcmp.ge.f32.partialorder %v2228_v46, %v2215_v39  ;;  %v1864_v39 = vld [vmem:[%s1922_s18 + $0x8] sm:$0xff]  ;;  %v1183_v61 = vmul.f32 16.0, %v2660_v27  ;;  %vm2671_vm4 = vmmov %vm2654_vm1 }
 0x271   : > { %v1009_v28 = vadd.f32 %v993_v52, %v865_v44  ;;  %v1175_v46 = vmul.f32 16.0, %v1864_v39  ;;  %v1871_v52 = vld [vmem:[%s1922_s18 + $0x40] sm:$0xff] }
 0x272   : > { %v974_v25 = vpop.permute.xlu1 %973  ;;  %v1182_v44 = vmul.f32 16.0, %v1871_v52 }
 0x273   : > { %v995_v2 = vmul.f32 %v974_v25, %v899_v22  ;;  %1781 = vmatprep.mubr.msk.f32.mxu0 %vm2646_vm13, %v1009_v28  ;;  %v2663_v25 = vld [vmem:[#allocation5_spill] sm:$0xff]  ;;  %vm2673_vm13 = vmmov %vm2654_vm1 }
 0x274   : > { %1782 = vmatmul.mubr.msk.f32.gmra.mrb[28].mxu0 %vm2648_vm0, %v1010_v29  ;;  %vm2674_vm0 = vmmov %vm2654_vm1 }
 0x275   : > { %v1011_v56 = vadd.f32 %v995_v2, %v867_v49  ;;  %v1185_v2 = vmul.f32 16.0, %v2663_v25 }
 0x277   : > { %1784 = vmatprep.mubr.msk.f32.mxu0 %vm2649_vm12, %v1011_v56  ;;  %vm2675_vm12 = vmmov %vm2674_vm0 }
 0x278   : > { %1785 = vmatmul.mubr.msk.f32.gmra.mrb[30].mxu0 %vm2652_vm2, %v1012_v8  ;;  %vm2676_vm2 = vmmov %vm2674_vm0 }
 0x32a   : > { %v1765_v55 = vpop.f32.mrb[16].mxu0 }
 0x32b   : > { %v1191_v42 = vsub.f32 %v1765_v55, %v1175_v46  ;;  %v1095_v26 = vpop.f32.mrb[17].mxu0 }
 0x32c   : > { %v1190_v20 = vsub.f32 %v1095_v26, %v1174_v54  ;;  %v1187_v54 = vmul.f32 16.0, %v2666_v40  ;;  %v2668_v26 = vld [vmem:[#allocation6_spill] sm:$0xff] }
 0x32d   : > { %v1207_v53 = vmul.f32 %v1191_v42, %v1191_v42  ;;  %v1186_v38 = vmul.f32 16.0, %v2668_v26 }
 0x32e   : > { %v1206_v48 = vmul.f32 %v1190_v20, %v1190_v20  ;;  %v1768_v51 = vpop.f32.mrb[18].mxu0 }
 0x32f   : > { %v1193_v37 = vsub.f32 %v1768_v51, %v1177_v35  ;;  %v1105_v32 = vpop.f32.mrb[19].mxu0  ;;  %v1225_v16 = vsel %vm2653_vm6, %v1207_v53, 0.0  ;;  %v2670_v51 = vld [vmem:[#allocation9_spill] sm:$0xff]  ;;  %vm1382_vm6 = vcmask 7168  }
 0x330   : > { %v1192_v9 = vsub.f32 %v1105_v32, %v1176_v45  ;;  %1226 = vadd.xlane.f32.xlu0 %v1225_v16  ;;  %v1222_v50 = vsel %vm2654_vm1, %v1206_v48, 0.0 }
 0x331   : > { %v1209_v11 = vmul.f32 %v1193_v37, %v1193_v37  ;;  %1223 = vadd.xlane.f32.xlu1 %v1222_v50  ;;  %v1189_v37 = vmul.f32 16.0, %v2670_v51 }
 0x332   : > { %v1208_v63 = vmul.f32 %v1192_v9, %v1192_v9  ;;  %v2672_v9 = vld [vmem:[#allocation8_spill] sm:$0xff] }
 0x333   : > { %v1231_v5 = vsel %vm2655_vm11, %v1209_v11, 0.0  ;;  %v1188_v50 = vmul.f32 16.0, %v2672_v9 }
 0x334   : > { %v1228_v57 = vsel %vm2656_vm5, %v1208_v63, 0.0 }
 0x335   : > { %1229 = vadd.xlane.f32.xlu0 %v1228_v57  ;;  %1232 = vadd.xlane.f32.xlu1 %v1231_v5 }
 0x336   : > { %v1771_v10 = vpop.f32.mrb[20].mxu0 }
 0x337   : > { %v1195_v13 = vsub.f32 %v1771_v10, %v1179_v30  ;;  %v1115_v21 = vpop.f32.mrb[21].mxu0 }
 0x338   : > { %v1194_v58 = vsub.f32 %v1115_v21, %v1178_v1 }
 0x339   : > { %v1211_v12 = vmul.f32 %v1195_v13, %v1195_v13 }
 0x33a   : > { %v1210_v59 = vmul.f32 %v1194_v58, %v1194_v58  ;;  %v1774_v17 = vpop.f32.mrb[22].mxu0 }
 0x33b   : > { %v1197_v62 = vsub.f32 %v1774_v17, %v1181_v60  ;;  %v1125_v36 = vpop.f32.mrb[23].mxu0  ;;  %v1237_v18 = vsel %vm2658_vm7, %v1211_v12, 0.0 }
 0x33c   : > { %v1196_v23 = vsub.f32 %v1125_v36, %v1180_v6  ;;  %1238 = vadd.xlane.f32.xlu1 %v1237_v18  ;;  %v1234_v41 = vsel %vm2659_vm15, %v1210_v59, 0.0 }
 0x33d   : > { %v1213_v14 = vmul.f32 %v1197_v62, %v1197_v62  ;;  %1235 = vadd.xlane.f32.xlu0 %v1234_v41 }
 0x33e   : > { %v1212_v15 = vmul.f32 %v1196_v23, %v1196_v23 }
 0x33f   : > { %v1777_v3 = vpop.f32.mrb[24].mxu0  ;;  %v1243_v28 = vsel %vm2661_vm14, %v1213_v14, 0.0 }
 0x340   : > { %v1199_v29 = vsub.f32 %v1777_v3, %v1183_v61  ;;  %v1135_v31 = vpop.f32.mrb[25].mxu0  ;;  %1244 = vadd.xlane.f32.xlu1 %v1243_v28  ;;  %v1240_v22 = vsel %vm2662_vm10, %v1212_v15, 0.0 }
 0x341   : > { %v1198_v49 = vsub.f32 %v1135_v31, %v1182_v44  ;;  %1241 = vadd.xlane.f32.xlu0 %v1240_v22 }
 0x342   : > { %v1215_v56 = vmul.f32 %v1199_v29, %v1199_v29 }
 0x343   : > { %v1214_v8 = vmul.f32 %v1198_v49, %v1198_v49  ;;  %v1780_v7 = vpop.f32.mrb[26].mxu0 }
 0x344   : > { %v1201_v33 = vsub.f32 %v1780_v7, %v1185_v2  ;;  %v1145_v39 = vpop.f32.mrb[27].mxu0  ;;  %v1249_v46 = vsel %vm2665_vm9, %v1215_v56, 0.0 }
 0x345   : > { %v1200_v55 = vsub.f32 %v1145_v39, %v1184_v19  ;;  %1250 = vadd.xlane.f32.xlu1 %v1249_v46  ;;  %v1246_v42 = vsel %vm2667_vm8, %v1214_v8, 0.0 }
 0x346   : > { %v1217_v35 = vmul.f32 %v1201_v33, %v1201_v33  ;;  %1247 = vadd.xlane.f32.xlu0 %v1246_v42 }
 0x347   : > { %v1216_v20 = vmul.f32 %v1200_v55, %v1200_v55  ;;  %v1783_v47 = vpop.f32.mrb[28].mxu0 }
 0x348   : > { %v1203_v45 = vsub.f32 %v1783_v47, %v1187_v54  ;;  %v1155_v53 = vpop.f32.mrb[29].mxu0  ;;  %v1255_v48 = vsel %vm2669_vm3, %v1217_v35, 0.0 }
 0x349   : > { %v1202_v32 = vsub.f32 %v1155_v53, %v1186_v38  ;;  %1256 = vadd.xlane.f32.xlu1 %v1255_v48  ;;  %v1252_v16 = vsel %vm2671_vm4, %v1216_v20, 0.0 }
 0x34a   : > { %v1219_v11 = vmul.f32 %v1203_v45, %v1203_v45  ;;  %1253 = vadd.xlane.f32.xlu0 %v1252_v16 }
 0x34b   : > { %v1218_v63 = vmul.f32 %v1202_v32, %v1202_v32  ;;  %v1786_v5 = vpop.f32.mrb[30].mxu0 }
 0x34c   : > { %v1205_v34 = vsub.f32 %v1786_v5, %v1189_v37  ;;  %v1165_v30 = vpop.f32.mrb[31].mxu0  ;;  %v1261_v57 = vsel %vm2673_vm13, %v1219_v11, 0.0 }
 0x34d   : > { %v1204_v0 = vsub.f32 %v1165_v30, %v1188_v50  ;;  %1262 = vadd.xlane.f32.xlu1 %v1261_v57  ;;  %v1258_v1 = vsel %vm2674_vm0, %v1218_v63, 0.0 }
 0x34e   : > { %v1221_v10 = vmul.f32 %v1205_v34, %v1205_v34  ;;  %1259 = vadd.xlane.f32.xlu0 %v1258_v1 }
 0x34f   : > { %v1220_v13 = vmul.f32 %v1204_v0, %v1204_v0 }
 0x350   : > { %v1267_v21 = vsel %vm2675_vm12, %v1221_v10, 0.0 }
 0x351   : > { %1268 = vadd.xlane.f32.xlu1 %v1267_v21  ;;  %v1264_v4 = vsel %vm2676_vm2, %v1220_v13, 0.0 }
 0x352   : > { %1265 = vadd.xlane.f32.xlu0 %v1264_v4 }
 0x3bd   : > { %v1227_v60 = vpop.xlane.xlu0 %1226 }
 0x3be   : > { %1832 = vrsqrt.f32 %v1227_v60  ;;  %v1224_v58 = vpop.xlane.xlu1 %1223  ;;  %vm1279_vm1 = vcmp.eq.f32.partialorder %v1227_v60, inf  ;;  %vm1281_vm11 = vcmp.eq.f32.partialorder %v1227_v60, 0.0  ;;  %v1282_v36 = vand.u32 2147483648, %v1227_v60 }
 0x3bf   : > { %1834 = vrsqrt.f32 %v1224_v58  ;;  %vm1272_vm5 = vcmp.eq.f32.partialorder %v1224_v58, inf  ;;  %v1275_v27 = vand.u32 2147483648, %v1224_v58  ;;  %vm1274_vm7 = vcmp.eq.f32.partialorder %v1224_v58, 0.0 }
 0x3c2   : > { %v1230_v43 = vpop.xlane.xlu0 %1229  ;;  %v1233_v6 = vpop.xlane.xlu1 %1232 }
 0x3c3   : > { %1836 = vrsqrt.f32 %v1230_v43  ;;  %vm1286_vm15 = vcmp.eq.f32.partialorder %v1230_v43, inf  ;;  %v1289_v31 = vand.u32 2147483648, %v1230_v43  ;;  %vm1288_vm14 = vcmp.eq.f32.partialorder %v1230_v43, 0.0 }
 0x3c4   : > { %1838 = vrsqrt.f32 %v1233_v6  ;;  %vm1293_vm10 = vcmp.eq.f32.partialorder %v1233_v6, inf  ;;  %v1296_v2 = vand.u32 2147483648, %v1233_v6  ;;  %vm1295_vm9 = vcmp.eq.f32.partialorder %v1233_v6, 0.0 }
 0x3c8   : > { %v1833_v12 = vpop.eup %1832 }
 0x3c9   : > { %v1835_v59 = vpop.eup %1834  ;;  %v1278_v17 = vmul.f32 %v1833_v12, %v1227_v60  ;;  %v1239_v62 = vpop.xlane.xlu1 %1238 }
 0x3ca   : > { %v1271_v18 = vmul.f32 %v1835_v59, %v1224_v58  ;;  %1840 = vrsqrt.f32 %v1239_v62  ;;  %v1236_v23 = vpop.xlane.xlu0 %1235  ;;  %vm1307_vm8 = vcmp.eq.f32.partialorder %v1239_v62, inf  ;;  %vm1309_vm3 = vcmp.eq.f32.partialorder %v1239_v62, 0.0 }
 0x3cb   : > { %v1280_v41 = vsel %vm1279_vm1, %v1227_v60, %v1278_v17  ;;  %1842 = vrsqrt.f32 %v1236_v23  ;;  %v1310_v46 = vand.u32 2147483648, %v1239_v62  ;;  %vm1300_vm4 = vcmp.eq.f32.partialorder %v1236_v23, inf }
 0x3cc   : > { %v1283_v61 = vsel %vm1281_vm11, %v1282_v36, %v1280_v41  ;;  %v1273_v14 = vsel %vm1272_vm5, %v1224_v58, %v1271_v18  ;;  %v1303_v42 = vand.u32 2147483648, %v1236_v23  ;;  %vm1302_vm13 = vcmp.eq.f32.partialorder %v1236_v23, 0.0 }
 0x3cd   : > { %v1837_v52 = vpop.eup %1836  ;;  %1384 = vst.msk [vmem:[%s2544_s27 + $0x8] sm:$0xff] %vm1382_vm6, %v1283_v61  ;;  %v1276_v44 = vsel %vm1274_vm7, %v1275_v27, %v1273_v14  ;;  %v1245_v15 = vpop.xlane.xlu1 %1244 }
 0x3ce   : > { %v1839_v3 = vpop.eup %1838  ;;  %1383 = vst.msk [vmem:[%s2544_s27] sm:$0xff] %vm1382_vm6, %v1276_v44  ;;  %v1285_v28 = vmul.f32 %v1837_v52, %v1230_v43  ;;  %1844 = vrsqrt.f32 %v1245_v15  ;;  %v1242_v29 = vpop.xlane.xlu0 %1241  ;;  %vm1321_vm0 = vcmp.eq.f32.partialorder %v1245_v15, inf  ;;  %vm1323_vm12 = vcmp.eq.f32.partialorder %v1245_v15, 0.0 }
 0x3cf   : > { %v1292_v22 = vmul.f32 %v1839_v3, %v1233_v6  ;;  %1846 = vrsqrt.f32 %v1242_v29  ;;  %v1324_v48 = vand.u32 2147483648, %v1245_v15  ;;  %vm1314_vm2 = vcmp.eq.f32.partialorder %v1242_v29, inf }
 0x3d0   : > { %v1287_v25 = vsel %vm1286_vm15, %v1230_v43, %v1285_v28  ;;  %v1317_v16 = vand.u32 2147483648, %v1242_v29  ;;  %vm1316_vm1 = vcmp.eq.f32.partialorder %v1242_v29, 0.0 }
 0x3d1   : > { %v1290_v49 = vsel %vm1288_vm14, %v1289_v31, %v1287_v25  ;;  %v1294_v24 = vsel %vm1293_vm10, %v1233_v6, %v1292_v22 }
 0x3d2   : > { %1385 = vst.msk [vmem:[%s2544_s27 + $0x10] sm:$0xff] %vm1382_vm6, %v1290_v49  ;;  %v1297_v19 = vsel %vm1295_vm9, %v1296_v2, %v1294_v24  ;;  %v1251_v56 = vpop.xlane.xlu1 %1250 }
 0x3d3   : > { %1386 = vst.msk [vmem:[%s2544_s27 + $0x18] sm:$0xff] %vm1382_vm6, %v1297_v19  ;;  %1848 = vrsqrt.f32 %v1251_v56  ;;  %v2554_v8 = vpop.xlane.xlu0 %1247  ;;  %vm1335_vm11 = vcmp.eq.f32.partialorder %v1251_v56, inf  ;;  %vm1337_vm5 = vcmp.eq.f32.partialorder %v1251_v56, 0.0  ;;  %v1338_v0 = vand.u32 2147483648, %v1251_v56 }
 0x3d4   : > { %v1841_v7 = vpop.eup %1840  ;;  %1850 = vrsqrt.f32 %v2554_v8  ;;  %vm1328_vm7 = vcmp.eq.f32.partialorder %v2554_v8, inf  ;;  %v1331_v21 = vand.u32 2147483648, %v2554_v8  ;;  %vm1330_vm15 = vcmp.eq.f32.partialorder %v2554_v8, 0.0 }
 0x3d5   : > { %v1843_v33 = vpop.eup %1842  ;;  %v1306_v39 = vmul.f32 %v1841_v7, %v1239_v62 }
 0x3d6   : > { %v1299_v40 = vmul.f32 %v1843_v33, %v1236_v23  ;;  %v2557_v54 = vpop.xlane.xlu1 %1256 }
 0x3d7   : > { %v1308_v55 = vsel %vm1307_vm8, %v1239_v62, %v1306_v39  ;;  %1852 = vrsqrt.f32 %v2557_v54  ;;  %v2560_v26 = vpop.xlane.xlu0 %1253  ;;  %vm1349_vm14 = vcmp.eq.f32.partialorder %v2557_v54, inf  ;;  %v1352_v59 = vand.u32 2147483648, %v2557_v54 }
 0x3d8   : > { %v1845_v38 = vpop.eup %1844  ;;  %v1311_v35 = vsel %vm1309_vm3, %v1310_v46, %v1308_v55  ;;  %v1301_v20 = vsel %vm1300_vm4, %v1236_v23, %v1299_v40  ;;  %1854 = vrsqrt.f32 %v2560_v26  ;;  %vm1351_vm10 = vcmp.eq.f32.partialorder %v2557_v54, 0.0 }
 0x3d9   : > { %v1847_v47 = vpop.eup %1846  ;;  %1388 = vst.msk [vmem:[%s2544_s27 + $0x28] sm:$0xff] %vm1382_vm6, %v1311_v35  ;;  %v1304_v45 = vsel %vm1302_vm13, %v1303_v42, %v1301_v20  ;;  %v1320_v53 = vmul.f32 %v1845_v38, %v1245_v15  ;;  %vm1342_vm9 = vcmp.eq.f32.partialorder %v2560_v26, inf  ;;  %v1345_v36 = vand.u32 2147483648, %v2560_v26 }
 0x3da   : > { %1387 = vst.msk [vmem:[%s2544_s27 + $0x20] sm:$0xff] %vm1382_vm6, %v1304_v45  ;;  %v1313_v51 = vmul.f32 %v1847_v47, %v1242_v29  ;;  %v1263_v37 = vpop.xlane.xlu1 %1262  ;;  %vm1344_vm8 = vcmp.eq.f32.partialorder %v2560_v26, 0.0 }
 0x3db   : > { %v1322_v32 = vsel %vm1321_vm0, %v1245_v15, %v1320_v53  ;;  %1856 = vrsqrt.f32 %v1263_v37  ;;  %v1260_v9 = vpop.xlane.xlu0 %1259  ;;  %vm1363_vm3 = vcmp.eq.f32.partialorder %v1263_v37, inf  ;;  %v1366_v52 = vand.u32 2147483648, %v1263_v37 }
 0x3dc   : > { %v1325_v50 = vsel %vm1323_vm12, %v1324_v48, %v1322_v32  ;;  %v1315_v11 = vsel %vm1314_vm2, %v1242_v29, %v1313_v51  ;;  %1858 = vrsqrt.f32 %v1260_v9  ;;  %vm1365_vm4 = vcmp.eq.f32.partialorder %v1263_v37, 0.0 }
 0x3dd   : > { %v1849_v63 = vpop.eup %1848  ;;  %1390 = vst.msk [vmem:[%s2544_s27 + $0x38] sm:$0xff] %vm1382_vm6, %v1325_v50  ;;  %v1318_v5 = vsel %vm1316_vm1, %v1317_v16, %v1315_v11  ;;  %vm1356_vm13 = vcmp.eq.f32.partialorder %v1260_v9, inf  ;;  %v1359_v3 = vand.u32 2147483648, %v1260_v9  ;;  %vm1358_vm0 = vcmp.eq.f32.partialorder %v1260_v9, 0.0 }
 0x3de   : > { %v1851_v34 = vpop.eup %1850  ;;  %1389 = vst.msk [vmem:[%s2544_s27 + $0x30] sm:$0xff] %vm1382_vm6, %v1318_v5  ;;  %v1334_v30 = vmul.f32 %v1849_v63, %v1251_v56  ;;  %v1269_v57 = vpop.xlane.xlu1 %1268 }
 0x3df   : > { %v1327_v1 = vmul.f32 %v1851_v34, %v2554_v8  ;;  %1860 = vrsqrt.f32 %v1269_v57  ;;  %v1266_v10 = vpop.xlane.xlu0 %1265  ;;  %vm1377_vm12 = vcmp.eq.f32.partialorder %v1269_v57, inf  ;;  %v1380_v49 = vand.u32 2147483648, %v1269_v57 }
 0x3e0   : > { %v1336_v13 = vsel %vm1335_vm11, %v1251_v56, %v1334_v30  ;;  %1862 = vrsqrt.f32 %v1266_v10  ;;  %vm1379_vm2 = vcmp.eq.f32.partialorder %v1269_v57, 0.0  ;;  %vm1370_vm1 = vcmp.eq.f32.partialorder %v1266_v10, inf }
 0x3e1   : > { %v1853_v4 = vpop.eup %1852  ;;  %v1339_v60 = vsel %vm1337_vm5, %v1338_v0, %v1336_v13  ;;  %v1329_v58 = vsel %vm1328_vm7, %v2554_v8, %v1327_v1  ;;  %v1373_v56 = vand.u32 2147483648, %v1266_v10  ;;  %vm1372_vm11 = vcmp.eq.f32.partialorder %v1266_v10, 0.0 }
 0x3e2   : > { %v1855_v43 = vpop.eup %1854  ;;  %1392 = vst.msk [vmem:[%s2544_s27 + $0x48] sm:$0xff] %vm1382_vm6, %v1339_v60  ;;  %v1332_v6 = vsel %vm1330_vm15, %v1331_v21, %v1329_v58  ;;  %v1348_v12 = vmul.f32 %v1853_v4, %v2557_v54 }
 0x3e3   : > { %1391 = vst.msk [vmem:[%s2544_s27 + $0x40] sm:$0xff] %vm1382_vm6, %v1332_v6  ;;  %v1341_v17 = vmul.f32 %v1855_v43, %v2560_v26 }
 0x3e4   : > { %v1350_v62 = vsel %vm1349_vm14, %v2557_v54, %v1348_v12 }
 0x3e5   : > { %v1857_v18 = vpop.eup %1856  ;;  %v1353_v23 = vsel %vm1351_vm10, %v1352_v59, %v1350_v62  ;;  %v1343_v41 = vsel %vm1342_vm9, %v2560_v26, %v1341_v17 }
 0x3e6   : > { %v1859_v27 = vpop.eup %1858  ;;  %1394 = vst.msk [vmem:[%s2544_s27 + $0x58] sm:$0xff] %vm1382_vm6, %v1353_v23  ;;  %v1346_v61 = vsel %vm1344_vm8, %v1345_v36, %v1343_v41  ;;  %v1362_v14 = vmul.f32 %v1857_v18, %v1263_v37 }
 0x3e7   : > { %1393 = vst.msk [vmem:[%s2544_s27 + $0x50] sm:$0xff] %vm1382_vm6, %v1346_v61  ;;  %v1355_v44 = vmul.f32 %v1859_v27, %v1260_v9 }
 0x3e8   : > { %v1364_v15 = vsel %vm1363_vm3, %v1263_v37, %v1362_v14 }
 0x3e9   : > { %v1861_v28 = vpop.eup %1860  ;;  %v1367_v29 = vsel %vm1365_vm4, %v1366_v52, %v1364_v15  ;;  %v1357_v31 = vsel %vm1356_vm13, %v1260_v9, %v1355_v44 }
 0x3ea   : > { %v1863_v22 = vpop.eup %1862  ;;  %1396 = vst.msk [vmem:[%s2544_s27 + $0x68] sm:$0xff] %vm1382_vm6, %v1367_v29  ;;  %v1360_v25 = vsel %vm1358_vm0, %v1359_v3, %v1357_v31  ;;  %v1376_v2 = vmul.f32 %v1861_v28, %v1269_v57 }
 0x3eb   : > { %1395 = vst.msk [vmem:[%s2544_s27 + $0x60] sm:$0xff] %vm1382_vm6, %v1360_v25  ;;  %v1369_v24 = vmul.f32 %v1863_v22, %v1266_v10 }
 0x3ec   : > { %v1378_v19 = vsel %vm1377_vm12, %v1269_v57, %v1376_v2 }
 0x3ed   : > { %v1381_v8 = vsel %vm1379_vm2, %v1380_v49, %v1378_v19  ;;  %v1371_v7 = vsel %vm1370_vm1, %v1266_v10, %v1369_v24 }
 0x3ee   : > { %1398 = vst.msk [vmem:[%s2544_s27 + $0x78] sm:$0xff] %vm1382_vm6, %v1381_v8  ;;  %v1374_v33 = vsel %vm1372_vm11, %v1373_v56, %v1371_v7 }
 0x3ef   : > { %1397 = vst.msk [vmem:[%s2544_s27 + $0x70] sm:$0xff] %vm1382_vm6, %v1374_v33 }
 0x3f0 PF: > { %s13_s12 = sadd.s32 1, %s1878_s12  }
 0x3f1   : > { %p10_p4 = scmp.ge.s32.totalorder %s13_s12, 4  }
 0x3f3   :  { %12 = sbr.rel (!%p10_p4) target bundleno = 1 (0x1), region = 68 }

</bundles_post_ra>
